<compile_context>
chip_gen: v6e
topology: v6e:2x2x1
jax: 0.10.0
libtpu: 0.0.40
codegen_flags: <defaults>
</compile_context>

<pallas_src>
import jax
import jax.numpy as jnp
from jax.experimental import pallas as pl
from jax.experimental.pallas import tpu as pltpu


_LANES = 128          # lane width of a vreg
_MAX_ROWS = 512       # 512 x 128 f32 per sub-band = 256 KiB -> 1 MiB per block


# ---------------------------------------------------------------------------
# Pallas kernel: apply the 4x4 orthogonal 2x2-block filter bank W to four
# lane-dense polyphase slabs.  For every output sub-band k in 0..3:
#     out[k, :, :] = sum_p  W[k, p] * x[p, :, :]
# Kept on the VPU on purpose: a K=4 contraction would be <1% MXU utilization.
# ---------------------------------------------------------------------------
def _wav4_kernel(w_ref, x_ref, o_ref):
    # w_ref: (4, 4) f32 in SMEM ; x_ref / o_ref: (4, tr, 128) f32 VMEM blocks.
    x0 = x_ref[0]
    x1 = x_ref[1]
    x2 = x_ref[2]
    x3 = x_ref[3]
    for k in range(4):  # unrolled at trace time
        o_ref[k] = (w_ref[k, 0] * x0 + w_ref[k, 1] * x1
                    + w_ref[k, 2] * x2 + w_ref[k, 3] * x3)


def _apply_filter_bank(x4, Wmat):
    """x4: (4, m) f32 flat polyphase slabs -> (4, m) transformed sub-bands."""
    x4 = x4.astype(jnp.float32)
    m = x4.shape[1]

    # Pad the flat axis to a multiple of the lane width, then view as
    # (4, rows, 128) so blocks are lane-dense and stores are unmasked.
    m_pad = -(-m // _LANES) * _LANES
    xp = x4 if m_pad == m else jnp.pad(x4, ((0, 0), (0, m_pad - m)))
    rows = m_pad // _LANES
    x3 = xp.reshape(4, rows, _LANES)

    # Largest block that keeps in+out double-buffering at ~4 MiB of VMEM.
    tr = rows if rows <= _MAX_ROWS else _MAX_ROWS
    grid = (rows + tr - 1) // tr

    out = pl.pallas_call(
        _wav4_kernel,
        out_shape=jax.ShapeDtypeStruct((4, rows, _LANES), jnp.float32),
        grid=(grid,),
        in_specs=[
            # 4x4 filter matrix lives in SMEM (scalar reads inside the kernel).
            pl.BlockSpec(memory_space=pltpu.MemorySpace.SMEM),
            pl.BlockSpec((4, tr, _LANES), lambda i: (0, i, 0)),
        ],
        out_specs=pl.BlockSpec((4, tr, _LANES), lambda i: (0, i, 0)),
        compiler_params=pltpu.CompilerParams(
            dimension_semantics=("parallel",)),
    )(Wmat.astype(jnp.float32), x3)

    out = out.reshape(4, m_pad)
    if m_pad != m:
        out = out[:, :m]
    return out


def _haar_step_subband_major(d, Wmat):
    """One wavelet step, sub-band-major.

    d: (n, S, S) f32  ->  (4, n, S//2, S//2)
    Sub-band 0 = low-pass, 1..3 = details.  The 2x2 polyphase rearrangement is
    one XLA relayout; the filter bank runs inside the Pallas kernel.
    """
    n, S, _ = d.shape
    h = S // 2
    # (n,S,S) -> (rowphase, colphase, n, i, j) -> (4, n*h*h)
    x4 = d.reshape(n, h, 2, h, 2).transpose(2, 4, 0, 1, 3).reshape(4, n * h * h)
    y = _apply_filter_bank(x4, Wmat)
    return y.reshape(4, n, h, h)


# ---------------------------------------------------------------------------
# Packet cascade (sub-band-major between levels; one final permutation)
# ---------------------------------------------------------------------------
def _packet_to_width(det, Width, Wmat):
    """det: (D, B, S, S) sub-band-major detail bands.

    Fully packet-decomposes down to spatial size Width and packs sub-bands
    into channels:  returns (B, D * (S // Width)**2, Width, Width) with the
    channel convention  c = ((d*4 + k_1)*4 + k_2)*4 + ...  (earliest level
    most significant), matching the reference implementation below.
    """
    D, B, S, _ = det.shape
    if S % Width != 0 or ((S // Width) & (S // Width - 1)) != 0:
        raise ValueError(
            f"spatial size {S} must be Width * power-of-two (Width={Width})")

    cur = det.reshape(D * B, S, S)
    levels = 0
    while S > Width:
        cur = _haar_step_subband_major(cur, Wmat).reshape(-1, S // 2, S // 2)
        S //= 2
        levels += 1

    # current flat leading index = (k_levels, ..., k_1, d, b)
    full = cur.reshape((4,) * levels + (D, B, Width, Width))
    perm = ((levels + 1, levels)
            + tuple(range(levels - 1, -1, -1))
            + (levels + 2, levels + 3))
    return full.transpose(perm).reshape(B, D * 4 ** levels, Width, Width)


# ---------------------------------------------------------------------------
# decompose_concat
# ---------------------------------------------------------------------------
def decompose_concat(x, N, Width, L, Wmat, tree, use_pallas=True):
    # TODO(synk): `tree` is ignored; full packet decomposition down to `Width`.
    orig_dtype = x.dtype
    xf = x.astype(jnp.float32)
    Wf = Wmat.astype(jnp.float32)

    if not use_pallas:
        # For KB-scale inputs the pure-JAX path avoids fixed pallas_call
        # overheads; exposed for callers, not used in the demo.
        (xj, b1), b0 = decompose_concat_ref(xf, N, Width, L, Wf, tree)
        return ((xj.astype(orig_dtype), b1.astype(orig_dtype)),
                b0.astype(orig_dtype))

    # first wavelet step on x_{j-1}: (B, L, L) -> (4, B, N, N)
    y = _haar_step_subband_major(xf, Wf)
    x_j = y[0]                                        # (B, N, N)
    bar_xj = _packet_to_width(y[1:4], Width, Wf)      # (B, 3*(N//Width)^2, W, W)

    # second step on x_j: (B, N, N) -> (4, B, N//2, N//2)
    y2 = _haar_step_subband_major(x_j, Wf)
    bar_xj1 = _packet_to_width(y2[1:4], Width, Wf)    # (B, 3*((N//2)//Width)^2, W, W)

    return ((x_j.astype(orig_dtype), bar_xj1.astype(orig_dtype)),
            bar_xj.astype(orig_dtype))


# ---------------------------------------------------------------------------
# Pure-JAX reference (defines the channel-packing convention; used for checks)
# ---------------------------------------------------------------------------
def _haar_step_ref(x, Wmat):
    B, C, S, _ = x.shape
    h = S // 2
    blk = x.reshape(B, C, h, 2, h, 2).transpose(0, 1, 2, 4, 3, 5)
    blk = blk.reshape(B, C, h, h, 4)
    return jnp.einsum("kp,bcijp->bckij", Wmat, blk)


def _packet_to_width_ref(d, Width, Wmat):
    B, C, S, _ = d.shape
    while S > Width:
        y = _haar_step_ref(d, Wmat)            # (B, C, 4, S//2, S//2)
        C, S = C * 4, S // 2
        d = y.reshape(B, C, S, S)
    return d


def decompose_concat_ref(x, N, Width, L, Wmat, tree):
    y = _haar_step_ref(x[:, None], Wmat)       # (B, 1, 4, N, N)
    x_j = y[:, 0, 0]
    bar_xj = _packet_to_width_ref(y[:, 0, 1:4], Width, Wmat)
    y2 = _haar_step_ref(x_j[:, None], Wmat)
    bar_xj1 = _packet_to_width_ref(y2[:, 0, 1:4], Width, Wmat)
    return (x_j, bar_xj1), bar_xj


class DecomposeWavPacket:
    """JAX/Pallas port of decompose_wav_packet."""

    def __init__(self, W, tree, L, Width, N, use_pallas=True):
        self.W = W
        self.tree = tree
        self.L = L
        self.Width = Width
        self.N = N
        self.use_pallas = use_pallas

    def __call__(self, x):
        return decompose_concat(x, self.N, self.Width, self.L, self.W,
                                self.tree, use_pallas=self.use_pallas)


if __name__ == "__main__":
    B, L, Width = 2, 32, 4
    N = L // 2

    key = jax.random.PRNGKey(0)
    x = jax.random.normal(key, (B, L, L), dtype=jnp.float32)

    # Deterministic orthogonal 2x2 (Haar) filter bank: row 0 = low-pass,
    # rows 1..3 = details.
    Wmat = 0.5 * jnp.array([[1.,  1.,  1.,  1.],
                            [1., -1.,  1., -1.],
                            [1.,  1., -1., -1.],
                            [1., -1., -1.,  1.]], dtype=jnp.float32)
    tree = None  # see TODO(synk) at top of file

    module = DecomposeWavPacket(Wmat, tree, L, Width, N)
    run = jax.jit(module.__call__)

    (x_j, bar_xj1), bar_xj = run(x)
    jax.block_until_ready((x_j, bar_xj1, bar_xj))

    # shape checks
    assert x_j.shape == (B, N, N)
    assert bar_xj.shape == (B, 3 * (N // Width) ** 2, Width, Width)
    assert bar_xj1.shape == (B, 3 * ((N // 2) // Width) ** 2, Width, Width)

    # correctness vs pure-JAX reference
    (x_j_r, bar_xj1_r), bar_xj_r = decompose_concat_ref(x, N, Width, L, Wmat, tree)
    assert bool(jnp.allclose(x_j, x_j_r, atol=1e-4))
    assert bool(jnp.allclose(bar_xj, bar_xj_r, atol=1e-4))
    assert bool(jnp.allclose(bar_xj1, bar_xj1_r, atol=1e-4))

    print("KERNEL_OK")
</pallas_src>

<mosaic_0001>
module attributes {stable_mosaic.version = 11 : i64} {
  func.func @_wav4_kernel(%arg0: i32, %arg1: memref<4x4xf32, #tpu.memory_space<smem>>, %arg2: memref<4x4x128xf32, #tpu.memory_space<vmem>>, %arg3: memref<4x4x128xf32, #tpu.memory_space<vmem>>) attributes {dimension_semantics = [#tpu.dimension_semantics<parallel>], iteration_bounds = array<i64: 1>, scalar_prefetch = 0 : i64, scratch_operands = 0 : i64, tpu.core_type = #tpu.core_type<tc>, window_params = [{transform_indices = @transform_0, window_bounds = array<i64: 4, 4>}, {transform_indices = @transform_1, window_bounds = array<i64: 4, 4, 128>}, {transform_indices = @transform_2, window_bounds = array<i64: 4, 4, 128>}]} {
    %c0 = arith.constant 0 : index
    %c0_0 = arith.constant 0 : index
    %c0_1 = arith.constant 0 : index
    %0 = vector.load %arg2[%c0, %c0_0, %c0_1] : memref<4x4x128xf32, #tpu.memory_space<vmem>>, vector<1x4x128xf32>
    %1 = vector.shape_cast %0 : vector<1x4x128xf32> to vector<4x128xf32>
    %c1 = arith.constant 1 : index
    %c0_2 = arith.constant 0 : index
    %c0_3 = arith.constant 0 : index
    %2 = vector.load %arg2[%c1, %c0_2, %c0_3] : memref<4x4x128xf32, #tpu.memory_space<vmem>>, vector<1x4x128xf32>
    %3 = vector.shape_cast %2 : vector<1x4x128xf32> to vector<4x128xf32>
    %c2 = arith.constant 2 : index
    %c0_4 = arith.constant 0 : index
    %c0_5 = arith.constant 0 : index
    %4 = vector.load %arg2[%c2, %c0_4, %c0_5] : memref<4x4x128xf32, #tpu.memory_space<vmem>>, vector<1x4x128xf32>
    %5 = vector.shape_cast %4 : vector<1x4x128xf32> to vector<4x128xf32>
    %c3 = arith.constant 3 : index
    %c0_6 = arith.constant 0 : index
    %c0_7 = arith.constant 0 : index
    %6 = vector.load %arg2[%c3, %c0_6, %c0_7] : memref<4x4x128xf32, #tpu.memory_space<vmem>>, vector<1x4x128xf32>
    %7 = vector.shape_cast %6 : vector<1x4x128xf32> to vector<4x128xf32>
    %c0_8 = arith.constant 0 : index
    %c0_9 = arith.constant 0 : index
    %8 = memref.load %arg1[%c0_8, %c0_9] : memref<4x4xf32, #tpu.memory_space<smem>>
    %9 = vector.broadcast %8 : f32 to vector<4x128xf32>
    %10 = arith.mulf %9, %1 : vector<4x128xf32>
    %c0_10 = arith.constant 0 : index
    %c1_11 = arith.constant 1 : index
    %11 = memref.load %arg1[%c0_10, %c1_11] : memref<4x4xf32, #tpu.memory_space<smem>>
    %12 = vector.broadcast %11 : f32 to vector<4x128xf32>
    %13 = arith.mulf %12, %3 : vector<4x128xf32>
    %14 = arith.addf %10, %13 : vector<4x128xf32>
    %c0_12 = arith.constant 0 : index
    %c2_13 = arith.constant 2 : index
    %15 = memref.load %arg1[%c0_12, %c2_13] : memref<4x4xf32, #tpu.memory_space<smem>>
    %16 = vector.broadcast %15 : f32 to vector<4x128xf32>
    %17 = arith.mulf %16, %5 : vector<4x128xf32>
    %18 = arith.addf %14, %17 : vector<4x128xf32>
    %c0_14 = arith.constant 0 : index
    %c3_15 = arith.constant 3 : index
    %19 = memref.load %arg1[%c0_14, %c3_15] : memref<4x4xf32, #tpu.memory_space<smem>>
    %20 = vector.broadcast %19 : f32 to vector<4x128xf32>
    %21 = arith.mulf %20, %7 : vector<4x128xf32>
    %22 = arith.addf %18, %21 : vector<4x128xf32>
    %c0_16 = arith.constant 0 : index
    %c0_17 = arith.constant 0 : index
    %c0_18 = arith.constant 0 : index
    %23 = vector.load %arg3[%c0_16, %c0_17, %c0_18] : memref<4x4x128xf32, #tpu.memory_space<vmem>>, vector<1x4x128xf32>
    %24 = vector.shape_cast %23 : vector<1x4x128xf32> to vector<4x128xf32>
    %25 = vector.shape_cast %22 : vector<4x128xf32> to vector<1x4x128xf32>
    tpu.vector_store %arg3[%c0_16, %c0_17, %c0_18], %25 {strides = array<i32>} : memref<4x4x128xf32, #tpu.memory_space<vmem>>, vector<1x4x128xf32>,
    %c1_19 = arith.constant 1 : index
    %c0_20 = arith.constant 0 : index
    %26 = memref.load %arg1[%c1_19, %c0_20] : memref<4x4xf32, #tpu.memory_space<smem>>
    %27 = vector.broadcast %26 : f32 to vector<4x128xf32>
    %28 = arith.mulf %27, %1 : vector<4x128xf32>
    %c1_21 = arith.constant 1 : index
    %c1_22 = arith.constant 1 : index
    %29 = memref.load %arg1[%c1_21, %c1_22] : memref<4x4xf32, #tpu.memory_space<smem>>
    %30 = vector.broadcast %29 : f32 to vector<4x128xf32>
    %31 = arith.mulf %30, %3 : vector<4x128xf32>
    %32 = arith.addf %28, %31 : vector<4x128xf32>
    %c1_23 = arith.constant 1 : index
    %c2_24 = arith.constant 2 : index
    %33 = memref.load %arg1[%c1_23, %c2_24] : memref<4x4xf32, #tpu.memory_space<smem>>
    %34 = vector.broadcast %33 : f32 to vector<4x128xf32>
    %35 = arith.mulf %34, %5 : vector<4x128xf32>
    %36 = arith.addf %32, %35 : vector<4x128xf32>
    %c1_25 = arith.constant 1 : index
    %c3_26 = arith.constant 3 : index
    %37 = memref.load %arg1[%c1_25, %c3_26] : memref<4x4xf32, #tpu.memory_space<smem>>
    %38 = vector.broadcast %37 : f32 to vector<4x128xf32>
    %39 = arith.mulf %38, %7 : vector<4x128xf32>
    %40 = arith.addf %36, %39 : vector<4x128xf32>
    %c1_27 = arith.constant 1 : index
    %c0_28 = arith.constant 0 : index
    %c0_29 = arith.constant 0 : index
    %41 = vector.load %arg3[%c1_27, %c0_28, %c0_29] : memref<4x4x128xf32, #tpu.memory_space<vmem>>, vector<1x4x128xf32>
    %42 = vector.shape_cast %41 : vector<1x4x128xf32> to vector<4x128xf32>
    %43 = vector.shape_cast %40 : vector<4x128xf32> to vector<1x4x128xf32>
    tpu.vector_store %arg3[%c1_27, %c0_28, %c0_29], %43 {strides = array<i32>} : memref<4x4x128xf32, #tpu.memory_space<vmem>>, vector<1x4x128xf32>,
    %c2_30 = arith.constant 2 : index
    %c0_31 = arith.constant 0 : index
    %44 = memref.load %arg1[%c2_30, %c0_31] : memref<4x4xf32, #tpu.memory_space<smem>>
    %45 = vector.broadcast %44 : f32 to vector<4x128xf32>
    %46 = arith.mulf %45, %1 : vector<4x128xf32>
    %c2_32 = arith.constant 2 : index
    %c1_33 = arith.constant 1 : index
    %47 = memref.load %arg1[%c2_32, %c1_33] : memref<4x4xf32, #tpu.memory_space<smem>>
    %48 = vector.broadcast %47 : f32 to vector<4x128xf32>
    %49 = arith.mulf %48, %3 : vector<4x128xf32>
    %50 = arith.addf %46, %49 : vector<4x128xf32>
    %c2_34 = arith.constant 2 : index
    %c2_35 = arith.constant 2 : index
    %51 = memref.load %arg1[%c2_34, %c2_35] : memref<4x4xf32, #tpu.memory_space<smem>>
    %52 = vector.broadcast %51 : f32 to vector<4x128xf32>
    %53 = arith.mulf %52, %5 : vector<4x128xf32>
    %54 = arith.addf %50, %53 : vector<4x128xf32>
    %c2_36 = arith.constant 2 : index
    %c3_37 = arith.constant 3 : index
    %55 = memref.load %arg1[%c2_36, %c3_37] : memref<4x4xf32, #tpu.memory_space<smem>>
    %56 = vector.broadcast %55 : f32 to vector<4x128xf32>
    %57 = arith.mulf %56, %7 : vector<4x128xf32>
    %58 = arith.addf %54, %57 : vector<4x128xf32>
    %c2_38 = arith.constant 2 : index
    %c0_39 = arith.constant 0 : index
    %c0_40 = arith.constant 0 : index
    %59 = vector.load %arg3[%c2_38, %c0_39, %c0_40] : memref<4x4x128xf32, #tpu.memory_space<vmem>>, vector<1x4x128xf32>
    %60 = vector.shape_cast %59 : vector<1x4x128xf32> to vector<4x128xf32>
    %61 = vector.shape_cast %58 : vector<4x128xf32> to vector<1x4x128xf32>
    tpu.vector_store %arg3[%c2_38, %c0_39, %c0_40], %61 {strides = array<i32>} : memref<4x4x128xf32, #tpu.memory_space<vmem>>, vector<1x4x128xf32>,
    %c3_41 = arith.constant 3 : index
    %c0_42 = arith.constant 0 : index
    %62 = memref.load %arg1[%c3_41, %c0_42] : memref<4x4xf32, #tpu.memory_space<smem>>
    %63 = vector.broadcast %62 : f32 to vector<4x128xf32>
    %64 = arith.mulf %63, %1 : vector<4x128xf32>
    %c3_43 = arith.constant 3 : index
    %c1_44 = arith.constant 1 : index
    %65 = memref.load %arg1[%c3_43, %c1_44] : memref<4x4xf32, #tpu.memory_space<smem>>
    %66 = vector.broadcast %65 : f32 to vector<4x128xf32>
    %67 = arith.mulf %66, %3 : vector<4x128xf32>
    %68 = arith.addf %64, %67 : vector<4x128xf32>
    %c3_45 = arith.constant 3 : index
    %c2_46 = arith.constant 2 : index
    %69 = memref.load %arg1[%c3_45, %c2_46] : memref<4x4xf32, #tpu.memory_space<smem>>
    %70 = vector.broadcast %69 : f32 to vector<4x128xf32>
    %71 = arith.mulf %70, %5 : vector<4x128xf32>
    %72 = arith.addf %68, %71 : vector<4x128xf32>
    %c3_47 = arith.constant 3 : index
    %c3_48 = arith.constant 3 : index
    %73 = memref.load %arg1[%c3_47, %c3_48] : memref<4x4xf32, #tpu.memory_space<smem>>
    %74 = vector.broadcast %73 : f32 to vector<4x128xf32>
    %75 = arith.mulf %74, %7 : vector<4x128xf32>
    %76 = arith.addf %72, %75 : vector<4x128xf32>
    %c3_49 = arith.constant 3 : index
    %c0_50 = arith.constant 0 : index
    %c0_51 = arith.constant 0 : index
    %77 = vector.load %arg3[%c3_49, %c0_50, %c0_51] : memref<4x4x128xf32, #tpu.memory_space<vmem>>, vector<1x4x128xf32>
    %78 = vector.shape_cast %77 : vector<1x4x128xf32> to vector<4x128xf32>
    %79 = vector.shape_cast %76 : vector<4x128xf32> to vector<1x4x128xf32>
    tpu.vector_store %arg3[%c3_49, %c0_50, %c0_51], %79 {strides = array<i32>} : memref<4x4x128xf32, #tpu.memory_space<vmem>>, vector<1x4x128xf32>,
    return
  }
  func.func @transform_0(%arg0: i32) -> (i32, i32) {
    %c0_i32 = arith.constant 0 : i32
    %c0_i32_0 = arith.constant 0 : i32
    %c0_i32_1 = arith.constant 0 : i32
    return %c0_i32, %c0_i32_0 : i32, i32
  }
  func.func @transform_1(%arg0: i32) -> (i32, i32, i32) {
    %c0_i32 = arith.constant 0 : i32
    %c0_i32_0 = arith.constant 0 : i32
    %c0_i32_1 = arith.constant 0 : i32
    return %c0_i32, %arg0, %c0_i32_0 : i32, i32, i32
  }
  func.func @transform_2(%arg0: i32) -> (i32, i32, i32) {
    %c0_i32 = arith.constant 0 : i32
    %c0_i32_0 = arith.constant 0 : i32
    %c0_i32_1 = arith.constant 0 : i32
    return %c0_i32, %arg0, %c0_i32_0 : i32, i32, i32
  }
}

module attributes {stable_mosaic.version = 11 : i64} {
  func.func @_wav4_kernel(%arg0: i32, %arg1: memref<4x4xf32, #tpu.memory_space<smem>>, %arg2: memref<4x1x128xf32, #tpu.memory_space<vmem>>, %arg3: memref<4x1x128xf32, #tpu.memory_space<vmem>>) attributes {dimension_semantics = [#tpu.dimension_semantics<parallel>], iteration_bounds = array<i64: 1>, scalar_prefetch = 0 : i64, scratch_operands = 0 : i64, tpu.core_type = #tpu.core_type<tc>, window_params = [{transform_indices = @transform_0, window_bounds = array<i64: 4, 4>}, {transform_indices = @transform_1, window_bounds = array<i64: 4, 1, 128>}, {transform_indices = @transform_2, window_bounds = array<i64: 4, 1, 128>}]} {
    %c0 = arith.constant 0 : index
    %c0_0 = arith.constant 0 : index
    %c0_1 = arith.constant 0 : index
    %0 = vector.load %arg2[%c0, %c0_0, %c0_1] : memref<4x1x128xf32, #tpu.memory_space<vmem>>, vector<1x1x128xf32>
    %1 = vector.shape_cast %0 : vector<1x1x128xf32> to vector<1x128xf32>
    %c1 = arith.constant 1 : index
    %c0_2 = arith.constant 0 : index
    %c0_3 = arith.constant 0 : index
    %2 = vector.load %arg2[%c1, %c0_2, %c0_3] : memref<4x1x128xf32, #tpu.memory_space<vmem>>, vector<1x1x128xf32>
    %3 = vector.shape_cast %2 : vector<1x1x128xf32> to vector<1x128xf32>
    %c2 = arith.constant 2 : index
    %c0_4 = arith.constant 0 : index
    %c0_5 = arith.constant 0 : index
    %4 = vector.load %arg2[%c2, %c0_4, %c0_5] : memref<4x1x128xf32, #tpu.memory_space<vmem>>, vector<1x1x128xf32>
    %5 = vector.shape_cast %4 : vector<1x1x128xf32> to vector<1x128xf32>
    %c3 = arith.constant 3 : index
    %c0_6 = arith.constant 0 : index
    %c0_7 = arith.constant 0 : index
    %6 = vector.load %arg2[%c3, %c0_6, %c0_7] : memref<4x1x128xf32, #tpu.memory_space<vmem>>, vector<1x1x128xf32>
    %7 = vector.shape_cast %6 : vector<1x1x128xf32> to vector<1x128xf32>
    %c0_8 = arith.constant 0 : index
    %c0_9 = arith.constant 0 : index
    %8 = memref.load %arg1[%c0_8, %c0_9] : memref<4x4xf32, #tpu.memory_space<smem>>
    %9 = vector.broadcast %8 : f32 to vector<1x128xf32>
    %10 = arith.mulf %9, %1 : vector<1x128xf32>
    %c0_10 = arith.constant 0 : index
    %c1_11 = arith.constant 1 : index
    %11 = memref.load %arg1[%c0_10, %c1_11] : memref<4x4xf32, #tpu.memory_space<smem>>
    %12 = vector.broadcast %11 : f32 to vector<1x128xf32>
    %13 = arith.mulf %12, %3 : vector<1x128xf32>
    %14 = arith.addf %10, %13 : vector<1x128xf32>
    %c0_12 = arith.constant 0 : index
    %c2_13 = arith.constant 2 : index
    %15 = memref.load %arg1[%c0_12, %c2_13] : memref<4x4xf32, #tpu.memory_space<smem>>
    %16 = vector.broadcast %15 : f32 to vector<1x128xf32>
    %17 = arith.mulf %16, %5 : vector<1x128xf32>
    %18 = arith.addf %14, %17 : vector<1x128xf32>
    %c0_14 = arith.constant 0 : index
    %c3_15 = arith.constant 3 : index
    %19 = memref.load %arg1[%c0_14, %c3_15] : memref<4x4xf32, #tpu.memory_space<smem>>
    %20 = vector.broadcast %19 : f32 to vector<1x128xf32>
    %21 = arith.mulf %20, %7 : vector<1x128xf32>
    %22 = arith.addf %18, %21 : vector<1x128xf32>
    %c0_16 = arith.constant 0 : index
    %c0_17 = arith.constant 0 : index
    %c0_18 = arith.constant 0 : index
    %23 = vector.load %arg3[%c0_16, %c0_17, %c0_18] : memref<4x1x128xf32, #tpu.memory_space<vmem>>, vector<1x1x128xf32>
    %24 = vector.shape_cast %23 : vector<1x1x128xf32> to vector<1x128xf32>
    %25 = vector.shape_cast %22 : vector<1x128xf32> to vector<1x1x128xf32>
    tpu.vector_store %arg3[%c0_16, %c0_17, %c0_18], %25 {strides = array<i32>} : memref<4x1x128xf32, #tpu.memory_space<vmem>>, vector<1x1x128xf32>,
    %c1_19 = arith.constant 1 : index
    %c0_20 = arith.constant 0 : index
    %26 = memref.load %arg1[%c1_19, %c0_20] : memref<4x4xf32, #tpu.memory_space<smem>>
    %27 = vector.broadcast %26 : f32 to vector<1x128xf32>
    %28 = arith.mulf %27, %1 : vector<1x128xf32>
    %c1_21 = arith.constant 1 : index
    %c1_22 = arith.constant 1 : index
    %29 = memref.load %arg1[%c1_21, %c1_22] : memref<4x4xf32, #tpu.memory_space<smem>>
    %30 = vector.broadcast %29 : f32 to vector<1x128xf32>
    %31 = arith.mulf %30, %3 : vector<1x128xf32>
    %32 = arith.addf %28, %31 : vector<1x128xf32>
    %c1_23 = arith.constant 1 : index
    %c2_24 = arith.constant 2 : index
    %33 = memref.load %arg1[%c1_23, %c2_24] : memref<4x4xf32, #tpu.memory_space<smem>>
    %34 = vector.broadcast %33 : f32 to vector<1x128xf32>
    %35 = arith.mulf %34, %5 : vector<1x128xf32>
    %36 = arith.addf %32, %35 : vector<1x128xf32>
    %c1_25 = arith.constant 1 : index
    %c3_26 = arith.constant 3 : index
    %37 = memref.load %arg1[%c1_25, %c3_26] : memref<4x4xf32, #tpu.memory_space<smem>>
    %38 = vector.broadcast %37 : f32 to vector<1x128xf32>
    %39 = arith.mulf %38, %7 : vector<1x128xf32>
    %40 = arith.addf %36, %39 : vector<1x128xf32>
    %c1_27 = arith.constant 1 : index
    %c0_28 = arith.constant 0 : index
    %c0_29 = arith.constant 0 : index
    %41 = vector.load %arg3[%c1_27, %c0_28, %c0_29] : memref<4x1x128xf32, #tpu.memory_space<vmem>>, vector<1x1x128xf32>
    %42 = vector.shape_cast %41 : vector<1x1x128xf32> to vector<1x128xf32>
    %43 = vector.shape_cast %40 : vector<1x128xf32> to vector<1x1x128xf32>
    tpu.vector_store %arg3[%c1_27, %c0_28, %c0_29], %43 {strides = array<i32>} : memref<4x1x128xf32, #tpu.memory_space<vmem>>, vector<1x1x128xf32>,
    %c2_30 = arith.constant 2 : index
    %c0_31 = arith.constant 0 : index
    %44 = memref.load %arg1[%c2_30, %c0_31] : memref<4x4xf32, #tpu.memory_space<smem>>
    %45 = vector.broadcast %44 : f32 to vector<1x128xf32>
    %46 = arith.mulf %45, %1 : vector<1x128xf32>
    %c2_32 = arith.constant 2 : index
    %c1_33 = arith.constant 1 : index
    %47 = memref.load %arg1[%c2_32, %c1_33] : memref<4x4xf32, #tpu.memory_space<smem>>
    %48 = vector.broadcast %47 : f32 to vector<1x128xf32>
    %49 = arith.mulf %48, %3 : vector<1x128xf32>
    %50 = arith.addf %46, %49 : vector<1x128xf32>
    %c2_34 = arith.constant 2 : index
    %c2_35 = arith.constant 2 : index
    %51 = memref.load %arg1[%c2_34, %c2_35] : memref<4x4xf32, #tpu.memory_space<smem>>
    %52 = vector.broadcast %51 : f32 to vector<1x128xf32>
    %53 = arith.mulf %52, %5 : vector<1x128xf32>
    %54 = arith.addf %50, %53 : vector<1x128xf32>
    %c2_36 = arith.constant 2 : index
    %c3_37 = arith.constant 3 : index
    %55 = memref.load %arg1[%c2_36, %c3_37] : memref<4x4xf32, #tpu.memory_space<smem>>
    %56 = vector.broadcast %55 : f32 to vector<1x128xf32>
    %57 = arith.mulf %56, %7 : vector<1x128xf32>
    %58 = arith.addf %54, %57 : vector<1x128xf32>
    %c2_38 = arith.constant 2 : index
    %c0_39 = arith.constant 0 : index
    %c0_40 = arith.constant 0 : index
    %59 = vector.load %arg3[%c2_38, %c0_39, %c0_40] : memref<4x1x128xf32, #tpu.memory_space<vmem>>, vector<1x1x128xf32>
    %60 = vector.shape_cast %59 : vector<1x1x128xf32> to vector<1x128xf32>
    %61 = vector.shape_cast %58 : vector<1x128xf32> to vector<1x1x128xf32>
    tpu.vector_store %arg3[%c2_38, %c0_39, %c0_40], %61 {strides = array<i32>} : memref<4x1x128xf32, #tpu.memory_space<vmem>>, vector<1x1x128xf32>,
    %c3_41 = arith.constant 3 : index
    %c0_42 = arith.constant 0 : index
    %62 = memref.load %arg1[%c3_41, %c0_42] : memref<4x4xf32, #tpu.memory_space<smem>>
    %63 = vector.broadcast %62 : f32 to vector<1x128xf32>
    %64 = arith.mulf %63, %1 : vector<1x128xf32>
    %c3_43 = arith.constant 3 : index
    %c1_44 = arith.constant 1 : index
    %65 = memref.load %arg1[%c3_43, %c1_44] : memref<4x4xf32, #tpu.memory_space<smem>>
    %66 = vector.broadcast %65 : f32 to vector<1x128xf32>
    %67 = arith.mulf %66, %3 : vector<1x128xf32>
    %68 = arith.addf %64, %67 : vector<1x128xf32>
    %c3_45 = arith.constant 3 : index
    %c2_46 = arith.constant 2 : index
    %69 = memref.load %arg1[%c3_45, %c2_46] : memref<4x4xf32, #tpu.memory_space<smem>>
    %70 = vector.broadcast %69 : f32 to vector<1x128xf32>
    %71 = arith.mulf %70, %5 : vector<1x128xf32>
    %72 = arith.addf %68, %71 : vector<1x128xf32>
    %c3_47 = arith.constant 3 : index
    %c3_48 = arith.constant 3 : index
    %73 = memref.load %arg1[%c3_47, %c3_48] : memref<4x4xf32, #tpu.memory_space<smem>>
    %74 = vector.broadcast %73 : f32 to vector<1x128xf32>
    %75 = arith.mulf %74, %7 : vector<1x128xf32>
    %76 = arith.addf %72, %75 : vector<1x128xf32>
    %c3_49 = arith.constant 3 : index
    %c0_50 = arith.constant 0 : index
    %c0_51 = arith.constant 0 : index
    %77 = vector.load %arg3[%c3_49, %c0_50, %c0_51] : memref<4x1x128xf32, #tpu.memory_space<vmem>>, vector<1x1x128xf32>
    %78 = vector.shape_cast %77 : vector<1x1x128xf32> to vector<1x128xf32>
    %79 = vector.shape_cast %76 : vector<1x128xf32> to vector<1x1x128xf32>
    tpu.vector_store %arg3[%c3_49, %c0_50, %c0_51], %79 {strides = array<i32>} : memref<4x1x128xf32, #tpu.memory_space<vmem>>, vector<1x1x128xf32>,
    return
  }
  func.func @transform_0(%arg0: i32) -> (i32, i32) {
    %c0_i32 = arith.constant 0 : i32
    %c0_i32_0 = arith.constant 0 : i32
    %c0_i32_1 = arith.constant 0 : i32
    return %c0_i32, %c0_i32_0 : i32, i32
  }
  func.func @transform_1(%arg0: i32) -> (i32, i32, i32) {
    %c0_i32 = arith.constant 0 : i32
    %c0_i32_0 = arith.constant 0 : i32
    %c0_i32_1 = arith.constant 0 : i32
    return %c0_i32, %arg0, %c0_i32_0 : i32, i32, i32
  }
  func.func @transform_2(%arg0: i32) -> (i32, i32, i32) {
    %c0_i32 = arith.constant 0 : i32
    %c0_i32_0 = arith.constant 0 : i32
    %c0_i32_1 = arith.constant 0 : i32
    return %c0_i32, %arg0, %c0_i32_0 : i32, i32, i32
  }
}

module attributes {stable_mosaic.version = 11 : i64} {
  func.func @_wav4_kernel(%arg0: i32, %arg1: memref<4x4xf32, #tpu.memory_space<smem>>, %arg2: memref<4x3x128xf32, #tpu.memory_space<vmem>>, %arg3: memref<4x3x128xf32, #tpu.memory_space<vmem>>) attributes {dimension_semantics = [#tpu.dimension_semantics<parallel>], iteration_bounds = array<i64: 1>, scalar_prefetch = 0 : i64, scratch_operands = 0 : i64, tpu.core_type = #tpu.core_type<tc>, window_params = [{transform_indices = @transform_0, window_bounds = array<i64: 4, 4>}, {transform_indices = @transform_1, window_bounds = array<i64: 4, 3, 128>}, {transform_indices = @transform_2, window_bounds = array<i64: 4, 3, 128>}]} {
    %c0 = arith.constant 0 : index
    %c0_0 = arith.constant 0 : index
    %c0_1 = arith.constant 0 : index
    %0 = vector.load %arg2[%c0, %c0_0, %c0_1] : memref<4x3x128xf32, #tpu.memory_space<vmem>>, vector<1x3x128xf32>
    %1 = vector.shape_cast %0 : vector<1x3x128xf32> to vector<3x128xf32>
    %c1 = arith.constant 1 : index
    %c0_2 = arith.constant 0 : index
    %c0_3 = arith.constant 0 : index
    %2 = vector.load %arg2[%c1, %c0_2, %c0_3] : memref<4x3x128xf32, #tpu.memory_space<vmem>>, vector<1x3x128xf32>
    %3 = vector.shape_cast %2 : vector<1x3x128xf32> to vector<3x128xf32>
    %c2 = arith.constant 2 : index
    %c0_4 = arith.constant 0 : index
    %c0_5 = arith.constant 0 : index
    %4 = vector.load %arg2[%c2, %c0_4, %c0_5] : memref<4x3x128xf32, #tpu.memory_space<vmem>>, vector<1x3x128xf32>
    %5 = vector.shape_cast %4 : vector<1x3x128xf32> to vector<3x128xf32>
    %c3 = arith.constant 3 : index
    %c0_6 = arith.constant 0 : index
    %c0_7 = arith.constant 0 : index
    %6 = vector.load %arg2[%c3, %c0_6, %c0_7] : memref<4x3x128xf32, #tpu.memory_space<vmem>>, vector<1x3x128xf32>
    %7 = vector.shape_cast %6 : vector<1x3x128xf32> to vector<3x128xf32>
    %c0_8 = arith.constant 0 : index
    %c0_9 = arith.constant 0 : index
    %8 = memref.load %arg1[%c0_8, %c0_9] : memref<4x4xf32, #tpu.memory_space<smem>>
    %9 = vector.broadcast %8 : f32 to vector<3x128xf32>
    %10 = arith.mulf %9, %1 : vector<3x128xf32>
    %c0_10 = arith.constant 0 : index
    %c1_11 = arith.constant 1 : index
    %11 = memref.load %arg1[%c0_10, %c1_11] : memref<4x4xf32, #tpu.memory_space<smem>>
    %12 = vector.broadcast %11 : f32 to vector<3x128xf32>
    %13 = arith.mulf %12, %3 : vector<3x128xf32>
    %14 = arith.addf %10, %13 : vector<3x128xf32>
    %c0_12 = arith.constant 0 : index
    %c2_13 = arith.constant 2 : index
    %15 = memref.load %arg1[%c0_12, %c2_13] : memref<4x4xf32, #tpu.memory_space<smem>>
    %16 = vector.broadcast %15 : f32 to vector<3x128xf32>
    %17 = arith.mulf %16, %5 : vector<3x128xf32>
    %18 = arith.addf %14, %17 : vector<3x128xf32>
    %c0_14 = arith.constant 0 : index
    %c3_15 = arith.constant 3 : index
    %19 = memref.load %arg1[%c0_14, %c3_15] : memref<4x4xf32, #tpu.memory_space<smem>>
    %20 = vector.broadcast %19 : f32 to vector<3x128xf32>
    %21 = arith.mulf %20, %7 : vector<3x128xf32>
    %22 = arith.addf %18, %21 : vector<3x128xf32>
    %c0_16 = arith.constant 0 : index
    %c0_17 = arith.constant 0 : index
    %c0_18 = arith.constant 0 : index
    %23 = vector.load %arg3[%c0_16, %c0_17, %c0_18] : memref<4x3x128xf32, #tpu.memory_space<vmem>>, vector<1x3x128xf32>
    %24 = vector.shape_cast %23 : vector<1x3x128xf32> to vector<3x128xf32>
    %25 = vector.shape_cast %22 : vector<3x128xf32> to vector<1x3x128xf32>
    tpu.vector_store %arg3[%c0_16, %c0_17, %c0_18], %25 {strides = array<i32>} : memref<4x3x128xf32, #tpu.memory_space<vmem>>, vector<1x3x128xf32>,
    %c1_19 = arith.constant 1 : index
    %c0_20 = arith.constant 0 : index
    %26 = memref.load %arg1[%c1_19, %c0_20] : memref<4x4xf32, #tpu.memory_space<smem>>
    %27 = vector.broadcast %26 : f32 to vector<3x128xf32>
    %28 = arith.mulf %27, %1 : vector<3x128xf32>
    %c1_21 = arith.constant 1 : index
    %c1_22 = arith.constant 1 : index
    %29 = memref.load %arg1[%c1_21, %c1_22] : memref<4x4xf32, #tpu.memory_space<smem>>
    %30 = vector.broadcast %29 : f32 to vector<3x128xf32>
    %31 = arith.mulf %30, %3 : vector<3x128xf32>
    %32 = arith.addf %28, %31 : vector<3x128xf32>
    %c1_23 = arith.constant 1 : index
    %c2_24 = arith.constant 2 : index
    %33 = memref.load %arg1[%c1_23, %c2_24] : memref<4x4xf32, #tpu.memory_space<smem>>
    %34 = vector.broadcast %33 : f32 to vector<3x128xf32>
    %35 = arith.mulf %34, %5 : vector<3x128xf32>
    %36 = arith.addf %32, %35 : vector<3x128xf32>
    %c1_25 = arith.constant 1 : index
    %c3_26 = arith.constant 3 : index
    %37 = memref.load %arg1[%c1_25, %c3_26] : memref<4x4xf32, #tpu.memory_space<smem>>
    %38 = vector.broadcast %37 : f32 to vector<3x128xf32>
    %39 = arith.mulf %38, %7 : vector<3x128xf32>
    %40 = arith.addf %36, %39 : vector<3x128xf32>
    %c1_27 = arith.constant 1 : index
    %c0_28 = arith.constant 0 : index
    %c0_29 = arith.constant 0 : index
    %41 = vector.load %arg3[%c1_27, %c0_28, %c0_29] : memref<4x3x128xf32, #tpu.memory_space<vmem>>, vector<1x3x128xf32>
    %42 = vector.shape_cast %41 : vector<1x3x128xf32> to vector<3x128xf32>
    %43 = vector.shape_cast %40 : vector<3x128xf32> to vector<1x3x128xf32>
    tpu.vector_store %arg3[%c1_27, %c0_28, %c0_29], %43 {strides = array<i32>} : memref<4x3x128xf32, #tpu.memory_space<vmem>>, vector<1x3x128xf32>,
    %c2_30 = arith.constant 2 : index
    %c0_31 = arith.constant 0 : index
    %44 = memref.load %arg1[%c2_30, %c0_31] : memref<4x4xf32, #tpu.memory_space<smem>>
    %45 = vector.broadcast %44 : f32 to vector<3x128xf32>
    %46 = arith.mulf %45, %1 : vector<3x128xf32>
    %c2_32 = arith.constant 2 : index
    %c1_33 = arith.constant 1 : index
    %47 = memref.load %arg1[%c2_32, %c1_33] : memref<4x4xf32, #tpu.memory_space<smem>>
    %48 = vector.broadcast %47 : f32 to vector<3x128xf32>
    %49 = arith.mulf %48, %3 : vector<3x128xf32>
    %50 = arith.addf %46, %49 : vector<3x128xf32>
    %c2_34 = arith.constant 2 : index
    %c2_35 = arith.constant 2 : index
    %51 = memref.load %arg1[%c2_34, %c2_35] : memref<4x4xf32, #tpu.memory_space<smem>>
    %52 = vector.broadcast %51 : f32 to vector<3x128xf32>
    %53 = arith.mulf %52, %5 : vector<3x128xf32>
    %54 = arith.addf %50, %53 : vector<3x128xf32>
    %c2_36 = arith.constant 2 : index
    %c3_37 = arith.constant 3 : index
    %55 = memref.load %arg1[%c2_36, %c3_37] : memref<4x4xf32, #tpu.memory_space<smem>>
    %56 = vector.broadcast %55 : f32 to vector<3x128xf32>
    %57 = arith.mulf %56, %7 : vector<3x128xf32>
    %58 = arith.addf %54, %57 : vector<3x128xf32>
    %c2_38 = arith.constant 2 : index
    %c0_39 = arith.constant 0 : index
    %c0_40 = arith.constant 0 : index
    %59 = vector.load %arg3[%c2_38, %c0_39, %c0_40] : memref<4x3x128xf32, #tpu.memory_space<vmem>>, vector<1x3x128xf32>
    %60 = vector.shape_cast %59 : vector<1x3x128xf32> to vector<3x128xf32>
    %61 = vector.shape_cast %58 : vector<3x128xf32> to vector<1x3x128xf32>
    tpu.vector_store %arg3[%c2_38, %c0_39, %c0_40], %61 {strides = array<i32>} : memref<4x3x128xf32, #tpu.memory_space<vmem>>, vector<1x3x128xf32>,
    %c3_41 = arith.constant 3 : index
    %c0_42 = arith.constant 0 : index
    %62 = memref.load %arg1[%c3_41, %c0_42] : memref<4x4xf32, #tpu.memory_space<smem>>
    %63 = vector.broadcast %62 : f32 to vector<3x128xf32>
    %64 = arith.mulf %63, %1 : vector<3x128xf32>
    %c3_43 = arith.constant 3 : index
    %c1_44 = arith.constant 1 : index
    %65 = memref.load %arg1[%c3_43, %c1_44] : memref<4x4xf32, #tpu.memory_space<smem>>
    %66 = vector.broadcast %65 : f32 to vector<3x128xf32>
    %67 = arith.mulf %66, %3 : vector<3x128xf32>
    %68 = arith.addf %64, %67 : vector<3x128xf32>
    %c3_45 = arith.constant 3 : index
    %c2_46 = arith.constant 2 : index
    %69 = memref.load %arg1[%c3_45, %c2_46] : memref<4x4xf32, #tpu.memory_space<smem>>
    %70 = vector.broadcast %69 : f32 to vector<3x128xf32>
    %71 = arith.mulf %70, %5 : vector<3x128xf32>
    %72 = arith.addf %68, %71 : vector<3x128xf32>
    %c3_47 = arith.constant 3 : index
    %c3_48 = arith.constant 3 : index
    %73 = memref.load %arg1[%c3_47, %c3_48] : memref<4x4xf32, #tpu.memory_space<smem>>
    %74 = vector.broadcast %73 : f32 to vector<3x128xf32>
    %75 = arith.mulf %74, %7 : vector<3x128xf32>
    %76 = arith.addf %72, %75 : vector<3x128xf32>
    %c3_49 = arith.constant 3 : index
    %c0_50 = arith.constant 0 : index
    %c0_51 = arith.constant 0 : index
    %77 = vector.load %arg3[%c3_49, %c0_50, %c0_51] : memref<4x3x128xf32, #tpu.memory_space<vmem>>, vector<1x3x128xf32>
    %78 = vector.shape_cast %77 : vector<1x3x128xf32> to vector<3x128xf32>
    %79 = vector.shape_cast %76 : vector<3x128xf32> to vector<1x3x128xf32>
    tpu.vector_store %arg3[%c3_49, %c0_50, %c0_51], %79 {strides = array<i32>} : memref<4x3x128xf32, #tpu.memory_space<vmem>>, vector<1x3x128xf32>,
    return
  }
  func.func @transform_0(%arg0: i32) -> (i32, i32) {
    %c0_i32 = arith.constant 0 : i32
    %c0_i32_0 = arith.constant 0 : i32
    %c0_i32_1 = arith.constant 0 : i32
    return %c0_i32, %c0_i32_0 : i32, i32
  }
  func.func @transform_1(%arg0: i32) -> (i32, i32, i32) {
    %c0_i32 = arith.constant 0 : i32
    %c0_i32_0 = arith.constant 0 : i32
    %c0_i32_1 = arith.constant 0 : i32
    return %c0_i32, %arg0, %c0_i32_0 : i32, i32, i32
  }
  func.func @transform_2(%arg0: i32) -> (i32, i32, i32) {
    %c0_i32 = arith.constant 0 : i32
    %c0_i32_0 = arith.constant 0 : i32
    %c0_i32_1 = arith.constant 0 : i32
    return %c0_i32, %arg0, %c0_i32_0 : i32, i32, i32
  }
}

</mosaic_0001>

<bundles_post_ra>
// kernel: squeeze.2
= control target key start
LH: loop header
LB: loop body
LE: loop exit
PB: predicated region body
PF: predicated region fallthrough
CT: control target
= control target key end

     0   :  { %s125_s0 = inlined_call_operand.vmem [shape: f32[1,4,128], index: 0, kind: input, shape index: {}]   ;;  %s126_s1 = inlined_call_operand.hbm [shape: f32[2,16,16], index: 1, kind: output, shape index: {}]  }
   0x1   :  { %v6_v0 = vld [vmem:[%s125_s0] sm:$0xf] }
   0x2   :  { %7 = vst [vmem:[#allocation2] sm:$0xf] %v6_v0 }
   0x3   :  { %2 = vsyncpa [#allocation1], 0  ;;  %s93_s0 = smov 112   ;;  %s94_s8 = smov 80   ;;  %vm9_vm0 = vcmask 130048  }
   0x4   :  { %s95_s9 = smov 96   ;;  %s96_s10 = smov 64  }
   0x5   :  { %s97_s11 = smov 48   ;;  %s98_s12 = smov 32  }
   0x6   :  { %s99_s13 = smov 16   ;;  %s100_s14 = smov [#allocation0]  }
   0x7   :  { %s57_s15 = sshll.u32 %s100_s14, 4  ;;  %s58_s15 = int_to_ptr.vmem [resolvable:$true] %s57_s15 }
   0x8   :  { %s71_s16 = scalar_lea.vmem %s58_s15, 512  ;;  %p76_p1 = scmp.lt.s32.totalorder %s58_s15, %s58_s15 }
   0x9   :  { %v11_v1 = vld [vmem:[#allocation2] sm:$0xf]   ;;  %p72_p0 = scmp.ne.s32.totalorder %s58_s15, %s71_s16  ;;  %p77_p2 = scmp.lt.s32.totalorder %s71_s16, %s71_s16 }
   0xa   :  { %v23_v2 = vld [vmem:[#allocation2] sm:$0xf]   ;;  %12 = vrot.lane.b32.xlu0 %v11_v1, %s93_s0 }
   0xb   :  { %24 = vrot.lane.b32.xlu1 %v23_v2, %s94_s8  ;;  %v17_v3 = vld [vmem:[#allocation2] sm:$0xf]   ;;  %p78_p3 = por %p77_p2, %p76_p1 }
   0xc   :  { %v29_v4 = vld [vmem:[#allocation2] sm:$0xf]  }
   0xd   :  { %v8_v5 = vld [vmem:[#allocation2] sm:$0xf]   ;;  %p79_p4 = pnand %p78_p3, %p72_p0 }
   0xe   :  { %10 = vst.msk [vmem:[#allocation0] ss:$8 sm:$0xf] %vm9_vm0, %v8_v5   ;;  %18 = vrot.lane.b32.xlu0 %v17_v3, %s95_s9  ;;  %v35_v6 = vld [vmem:[#allocation2] sm:$0xf]  }
   0xf   :  { %30 = vrot.lane.b32.xlu1 %v29_v4, %s96_s10  ;;  %v41_v7 = vld [vmem:[#allocation2] sm:$0xf]  }
  0x10   :  { %v47_v8 = vld [vmem:[#allocation2] sm:$0xf]  }
  0x12   :  { %36 = vrot.lane.b32.xlu0 %v35_v6, %s97_s11 }
  0x13   :  { %42 = vrot.lane.b32.xlu1 %v41_v7, %s98_s12 }
  0x16   :  { %48 = vrot.lane.b32.xlu0 %v47_v8, %s99_s13 }
  0x7c   :  { %v13_v9 = vpop.permute.xlu0 %12  }
  0x7d   :  { %v25_v10 = vpop.permute.xlu1 %24   ;;  %16 = vst.msk [vmem:[#allocation0 + $0x1] ss:$8 sm:$0xf] %vm9_vm0, %v13_v9  }
  0x7e   :  { %28 = vst.msk [vmem:[#allocation0 + $0x3] ss:$8 sm:$0xf] %vm9_vm0, %v25_v10  }
  0x80   :  { %v19_v11 = vpop.permute.xlu0 %18  }
  0x81   :  { %v31_v12 = vpop.permute.xlu1 %30   ;;  %22 = vst.msk [vmem:[#allocation0 + $0x2] ss:$8 sm:$0xf] %vm9_vm0, %v19_v11  }
  0x82   :  { %34 = vst.msk [vmem:[#allocation0 + $0x4] ss:$8 sm:$0xf] %vm9_vm0, %v31_v12  }
  0x84   :  { %v37_v13 = vpop.permute.xlu0 %36  }
  0x85   :  { %v43_v14 = vpop.permute.xlu1 %42   ;;  %40 = vst.msk [vmem:[#allocation0 + $0x5] ss:$8 sm:$0xf] %vm9_vm0, %v37_v13  }
  0x86   :  { %46 = vst.msk [vmem:[#allocation0 + $0x6] ss:$8 sm:$0xf] %vm9_vm0, %v43_v14  }
  0x88   :  { %v49_v15 = vpop.permute.xlu0 %48  }
  0x89   :  { %52 = vst.msk [vmem:[#allocation0 + $0x7] ss:$8 sm:$0xf] %vm9_vm0, %v49_v15  }
  0x8a   :  { %82 = shalt.err (!%p79_p4)
}
  0x8b   :  { %60 = dma.vmem_to_hbm [thread:$0]  %s58_s15, 512, %s126_s1, [#allocation1]  }
  0x8c   :  { %91 = dma.done.wait [#allocation1], 512  }
  0x8d   :  { %92 = vsyncadd [#allocation1], 4294966784 }
  0x8e   :  { %62 = vsyncpa [#allocation1], 1 }

// kernel: squeeze.3
= control target key start
LH: loop header
LB: loop body
LE: loop exit
PB: predicated region body
PF: predicated region fallthrough
CT: control target
= control target key end

     0   :  { %s1091_s8 = smov 122   ;;  %s1092_s9 = smov 124   ;;  %vm8_vm0 = vcmask 15360   ;;  %s2190_s0 = inlined_call_operand.vmem [shape: f32[1,4,128], index: 0, kind: input, shape index: {}]   ;;  %s2191_s1 = inlined_call_operand.vmem [shape: f32[2,8,2,8,2], index: 1, kind: output, shape index: {}]  }
   0x1   :  { %v5_v0 = vld [vmem:[%s2190_s0] sm:$0xf]  ;;  %s1090_s0 = smov 126   ;;  %s1093_s10 = smov 120  }
   0x2   :  { %6 = vst [vmem:[#allocation0] sm:$0xf] %v5_v0  ;;  %s1094_s11 = smov 118   ;;  %s1095_s12 = smov 116  }
   0x3   :  { %s1096_s13 = smov 114   ;;  %s1097_s14 = smov 112  }
   0x4   :  { %s1098_s15 = smov 110   ;;  %s1099_s16 = smov 108  }
   0x5   :  { %s1100_s17 = smov 106   ;;  %s1101_s18 = smov 104  }
   0x6   :  { %s1102_s19 = smov 102   ;;  %s1103_s20 = smov 100  }
   0x7   :  { %s1104_s21 = smov 98   ;;  %s1105_s22 = smov 96  }
   0x8   :  { %s1106_s23 = smov 94   ;;  %s1107_s24 = smov 92  }
   0x9   :  { %v16_v1 = vld [vmem:[#allocation0] sm:$0xf]   ;;  %s1108_s25 = smov 90   ;;  %s1109_s26 = smov 88  }
   0xa   :  { %v40_v2 = vld [vmem:[#allocation0] sm:$0xf]   ;;  %17 = vrot.lane.b32.xlu0 %v16_v1, %s1090_s0  ;;  %s1110_s27 = smov 86   ;;  %s1111_s28 = smov 84  }
   0xb   :  { %41 = vrot.lane.b32.xlu1 %v40_v2, %s1091_s8  ;;  %v28_v3 = vld [vmem:[#allocation0] sm:$0xf]   ;;  %s1112_s29 = smov 82   ;;  %s1113_s30 = smov 80  }
   0xc   :  { %v52_v4 = vld [vmem:[#allocation0] sm:$0xf]   ;;  %s1114_s2 = smov 78   ;;  %s1115_s3 = smov 76  }
   0xd   :  { %v64_v5 = vld [vmem:[#allocation0] sm:$0xf]   ;;  %s1116_s4 = smov 74   ;;  %s1117_s5 = smov 72  }
   0xe   :  { %29 = vrot.lane.b32.xlu0 %v28_v3, %s1092_s9  ;;  %v76_v6 = vld [vmem:[#allocation0] sm:$0xf]   ;;  %s1118_s6 = smov 70   ;;  %s1119_s7 = smov 68  }
   0xf   :  { %53 = vrot.lane.b32.xlu1 %v52_v4, %s1093_s10  ;;  %v88_v7 = vld [vmem:[#allocation0] sm:$0xf]   ;;  %s1120_s0 = smov 66   ;;  %s1121_s8 = smov 64  }
  0x10   :  { %v100_v8 = vld [vmem:[#allocation0] sm:$0xf]   ;;  %s1122_s9 = smov 62   ;;  %s1123_s10 = smov 60  }
  0x11   :  { %v112_v9 = vld [vmem:[#allocation0] sm:$0xf]  }
  0x12   :  { %65 = vrot.lane.b32.xlu0 %v64_v5, %s1094_s11  ;;  %v124_v10 = vld [vmem:[#allocation0] sm:$0xf]   ;;  %s1124_s11 = smov 58  }
  0x13   :  { %77 = vrot.lane.b32.xlu1 %v76_v6, %s1095_s12  ;;  %v136_v11 = vld [vmem:[#allocation0] sm:$0xf]   ;;  %s1125_s12 = smov 56  }
  0x14   :  { %v148_v12 = vld [vmem:[#allocation0] sm:$0xf]  }
  0x15   :  { %v160_v13 = vld [vmem:[#allocation0] sm:$0xf]  }
  0x16   :  { %89 = vrot.lane.b32.xlu0 %v88_v7, %s1096_s13  ;;  %v172_v14 = vld [vmem:[#allocation0] sm:$0xf]   ;;  %s1126_s13 = smov 54  }
  0x17   :  { %101 = vrot.lane.b32.xlu1 %v100_v8, %s1097_s14  ;;  %v184_v15 = vld [vmem:[#allocation0] sm:$0xf]   ;;  %s1127_s14 = smov 52  }
  0x18   :  { %v196_v16 = vld [vmem:[#allocation0] sm:$0xf]  }
  0x19   :  { %v208_v17 = vld [vmem:[#allocation0] sm:$0xf]  }
  0x1a   :  { %113 = vrot.lane.b32.xlu0 %v112_v9, %s1098_s15  ;;  %v220_v18 = vld [vmem:[#allocation0] sm:$0xf]   ;;  %s1128_s15 = smov 50  }
  0x1b   :  { %125 = vrot.lane.b32.xlu1 %v124_v10, %s1099_s16  ;;  %v232_v19 = vld [vmem:[#allocation0] sm:$0xf]   ;;  %s1129_s16 = smov 48  }
  0x1c   :  { %v244_v20 = vld [vmem:[#allocation0] sm:$0xf]  }
  0x1d   :  { %v256_v21 = vld [vmem:[#allocation0] sm:$0xf]  }
  0x1e   :  { %137 = vrot.lane.b32.xlu0 %v136_v11, %s1100_s17  ;;  %v268_v22 = vld [vmem:[#allocation0] sm:$0xf]   ;;  %s1130_s17 = smov 46  }
  0x1f   :  { %149 = vrot.lane.b32.xlu1 %v148_v12, %s1101_s18  ;;  %v280_v23 = vld [vmem:[#allocation0] sm:$0xf]   ;;  %s1131_s18 = smov 44  }
  0x20   :  { %v292_v24 = vld [vmem:[#allocation0] sm:$0xf]  }
  0x21   :  { %v304_v25 = vld [vmem:[#allocation0] sm:$0xf]  }
  0x22   :  { %161 = vrot.lane.b32.xlu0 %v160_v13, %s1102_s19  ;;  %v316_v26 = vld [vmem:[#allocation0] sm:$0xf]   ;;  %s1132_s19 = smov 42  }
  0x23   :  { %173 = vrot.lane.b32.xlu1 %v172_v14, %s1103_s20  ;;  %v328_v27 = vld [vmem:[#allocation0] sm:$0xf]   ;;  %s1133_s20 = smov 40  }
  0x24   :  { %v340_v28 = vld [vmem:[#allocation0] sm:$0xf]  }
  0x25   :  { %v352_v29 = vld [vmem:[#allocation0] sm:$0xf]  }
  0x26   :  { %185 = vrot.lane.b32.xlu0 %v184_v15, %s1104_s21  ;;  %v364_v30 = vld [vmem:[#allocation0] sm:$0xf]   ;;  %s1134_s21 = smov 38  }
  0x27   :  { %197 = vrot.lane.b32.xlu1 %v196_v16, %s1105_s22  ;;  %v376_v31 = vld [vmem:[#allocation0] sm:$0xf]   ;;  %s1135_s22 = smov 36  }
  0x28   :  { %v388_v32 = vld [vmem:[#allocation0] sm:$0xf]  }
  0x29   :  { %v400_v33 = vld [vmem:[#allocation0] sm:$0xf]  }
  0x2a   :  { %209 = vrot.lane.b32.xlu0 %v208_v17, %s1106_s23  ;;  %v412_v34 = vld [vmem:[#allocation0] sm:$0xf]   ;;  %s1136_s23 = smov 34  }
  0x2b   :  { %221 = vrot.lane.b32.xlu1 %v220_v18, %s1107_s24  ;;  %v424_v35 = vld [vmem:[#allocation0] sm:$0xf]   ;;  %s1137_s24 = smov 32  }
  0x2c   :  { %v436_v36 = vld [vmem:[#allocation0] sm:$0xf]  }
  0x2d   :  { %v448_v37 = vld [vmem:[#allocation0] sm:$0xf]  }
  0x2e   :  { %233 = vrot.lane.b32.xlu0 %v232_v19, %s1108_s25  ;;  %v460_v38 = vld [vmem:[#allocation0] sm:$0xf]   ;;  %s1138_s25 = smov 30  }
  0x2f   :  { %245 = vrot.lane.b32.xlu1 %v244_v20, %s1109_s26  ;;  %v472_v39 = vld [vmem:[#allocation0] sm:$0xf]   ;;  %s1139_s26 = smov 28  }
  0x30   :  { %v484_v40 = vld [vmem:[#allocation0] sm:$0xf]  }
  0x31   :  { %v496_v41 = vld [vmem:[#allocation0] sm:$0xf]  }
  0x32   :  { %257 = vrot.lane.b32.xlu0 %v256_v21, %s1110_s27  ;;  %v508_v42 = vld [vmem:[#allocation0] sm:$0xf]   ;;  %s1140_s27 = smov 26  }
  0x33   :  { %269 = vrot.lane.b32.xlu1 %v268_v22, %s1111_s28  ;;  %v520_v43 = vld [vmem:[#allocation0] sm:$0xf]   ;;  %s1141_s28 = smov 24  }
  0x34   :  { %v532_v44 = vld [vmem:[#allocation0] sm:$0xf]  }
  0x35   :  { %v544_v45 = vld [vmem:[#allocation0] sm:$0xf]  }
  0x36   :  { %281 = vrot.lane.b32.xlu0 %v280_v23, %s1112_s29  ;;  %v556_v46 = vld [vmem:[#allocation0] sm:$0xf]   ;;  %s1142_s29 = smov 22  }
  0x37   :  { %293 = vrot.lane.b32.xlu1 %v292_v24, %s1113_s30  ;;  %v568_v47 = vld [vmem:[#allocation0] sm:$0xf]   ;;  %s1143_s30 = smov 20  }
  0x38   :  { %v580_v48 = vld [vmem:[#allocation0] sm:$0xf]  }
  0x39   :  { %v592_v49 = vld [vmem:[#allocation0] sm:$0xf]  }
  0x3a   :  { %305 = vrot.lane.b32.xlu0 %v304_v25, %s1114_s2  ;;  %v604_v50 = vld [vmem:[#allocation0] sm:$0xf]   ;;  %s1144_s2 = smov 18  }
  0x3b   :  { %317 = vrot.lane.b32.xlu1 %v316_v26, %s1115_s3  ;;  %v616_v51 = vld [vmem:[#allocation0] sm:$0xf]   ;;  %s1145_s3 = smov 16  }
  0x3c   :  { %v628_v52 = vld [vmem:[#allocation0] sm:$0xf]  }
  0x3d   :  { %v640_v53 = vld [vmem:[#allocation0] sm:$0xf]  }
  0x3e   :  { %329 = vrot.lane.b32.xlu0 %v328_v27, %s1116_s4  ;;  %v652_v54 = vld [vmem:[#allocation0] sm:$0xf]  }
  0x3f   :  { %341 = vrot.lane.b32.xlu1 %v340_v28, %s1117_s5  ;;  %v664_v55 = vld [vmem:[#allocation0] sm:$0xf]  }
  0x40   :  { %v676_v56 = vld [vmem:[#allocation0] sm:$0xf]  }
  0x41   :  { %v688_v57 = vld [vmem:[#allocation0] sm:$0xf]  }
  0x42   :  { %353 = vrot.lane.b32.xlu0 %v352_v29, %s1118_s6  ;;  %v700_v58 = vld [vmem:[#allocation0] sm:$0xf]   ;;  %s1152_s6 = smov 2  }
  0x43   :  { %365 = vrot.lane.b32.xlu1 %v364_v30, %s1119_s7  ;;  %v7_v59 = vld [vmem:[#allocation0] sm:$0xf]  }
  0x44   :  { %9 = vst.msk [vmem:[%s2191_s1] sm:$0x1] %vm8_vm0, %v7_v59   ;;  %772 = vst.msk [vmem:[%s2191_s1 + $0x3f] sm:$0x2] %vm8_vm0, %v7_v59   ;;  %v712_v60 = vld [vmem:[#allocation0] sm:$0xf]  }
  0x45   :  { %773 = vst.msk [vmem:[%s2191_s1 + $0x7e] sm:$0x4] %vm8_vm0, %v7_v59   ;;  %774 = vst.msk [vmem:[%s2191_s1 + $0xbd] sm:$0x8] %vm8_vm0, %v7_v59   ;;  %v724_v61 = vld [vmem:[#allocation0] sm:$0xf]  }
  0x46   :  { %377 = vrot.lane.b32.xlu0 %v376_v31, %s1120_s0  ;;  %v736_v0 = vld [vmem:[#allocation0] sm:$0xf]  }
  0x47   :  { %389 = vrot.lane.b32.xlu1 %v388_v32, %s1121_s8  ;;  %v748_v1 = vld [vmem:[#allocation0] sm:$0xf]  }
  0x48   :  { %v760_v4 = vld [vmem:[#allocation0] sm:$0xf]  }
  0x4a   :  { %401 = vrot.lane.b32.xlu0 %v400_v33, %s1122_s9 }
  0x4b   :  { %413 = vrot.lane.b32.xlu1 %v412_v34, %s1123_s10 }
  0x4e   :  { %425 = vrot.lane.b32.xlu0 %v424_v35, %s1124_s11  ;;  %s1146_s11 = smov 14  }
  0x4f   :  { %437 = vrot.lane.b32.xlu1 %v436_v36, %s1125_s12  ;;  %s1147_s12 = smov 12  }
  0x52   :  { %449 = vrot.lane.b32.xlu0 %v448_v37, %s1126_s13 }
  0x53   :  { %461 = vrot.lane.b32.xlu1 %v460_v38, %s1127_s14 }
  0x56   :  { %473 = vrot.lane.b32.xlu0 %v472_v39, %s1128_s15 }
  0x57   :  { %485 = vrot.lane.b32.xlu1 %v484_v40, %s1129_s16 }
  0x5a   :  { %497 = vrot.lane.b32.xlu0 %v496_v41, %s1130_s17  ;;  %s1150_s17 = smov 6  }
  0x5b   :  { %509 = vrot.lane.b32.xlu1 %v508_v42, %s1131_s18  ;;  %s1151_s18 = smov 4  }
  0x5e   :  { %521 = vrot.lane.b32.xlu0 %v520_v43, %s1132_s19 }
  0x5f   :  { %533 = vrot.lane.b32.xlu1 %v532_v44, %s1133_s20 }
  0x62   :  { %545 = vrot.lane.b32.xlu0 %v544_v45, %s1134_s21 }
  0x63   :  { %557 = vrot.lane.b32.xlu1 %v556_v46, %s1135_s22 }
  0x66   :  { %569 = vrot.lane.b32.xlu0 %v568_v47, %s1136_s23 }
  0x67   :  { %581 = vrot.lane.b32.xlu1 %v580_v48, %s1137_s24 }
  0x6a   :  { %593 = vrot.lane.b32.xlu0 %v592_v49, %s1138_s25 }
  0x6b   :  { %605 = vrot.lane.b32.xlu1 %v604_v50, %s1139_s26 }
  0x6e   :  { %617 = vrot.lane.b32.xlu0 %v616_v51, %s1140_s27 }
  0x6f   :  { %629 = vrot.lane.b32.xlu1 %v628_v52, %s1141_s28 }
  0x72   :  { %641 = vrot.lane.b32.xlu0 %v640_v53, %s1142_s29  ;;  %s1148_s29 = smov 10  }
  0x73   :  { %653 = vrot.lane.b32.xlu1 %v652_v54, %s1143_s30  ;;  %s1149_s30 = smov 8  }
  0x76   :  { %665 = vrot.lane.b32.xlu0 %v664_v55, %s1144_s2 }
  0x77   :  { %677 = vrot.lane.b32.xlu1 %v676_v56, %s1145_s3 }
  0x7a   :  { %689 = vrot.lane.b32.xlu0 %v688_v57, %s1146_s11 }
  0x7b   :  { %701 = vrot.lane.b32.xlu1 %v700_v58, %s1147_s12 }
  0x7c   :  { %v18_v62 = vpop.permute.xlu0 %17  }
  0x7d   :  { %v42_v63 = vpop.permute.xlu1 %41   ;;  %775 = vst.msk [vmem:[%s2191_s1 + $0x1] sm:$0x1] %vm8_vm0, %v18_v62   ;;  %776 = vst.msk [vmem:[%s2191_s1 + $0x40] sm:$0x2] %vm8_vm0, %v18_v62  }
  0x7e   :  { %777 = vst.msk [vmem:[%s2191_s1 + $0x7f] sm:$0x4] %vm8_vm0, %v18_v62   ;;  %778 = vst.msk [vmem:[%s2191_s1 + $0xbe] sm:$0x8] %vm8_vm0, %v18_v62   ;;  %713 = vrot.lane.b32.xlu0 %v712_v60, %s1148_s29 }
  0x7f   :  { %783 = vst.msk [vmem:[%s2191_s1 + $0x3] sm:$0x1] %vm8_vm0, %v42_v63   ;;  %784 = vst.msk [vmem:[%s2191_s1 + $0x42] sm:$0x2] %vm8_vm0, %v42_v63   ;;  %725 = vrot.lane.b32.xlu1 %v724_v61, %s1149_s30 }
  0x80   :  { %785 = vst.msk [vmem:[%s2191_s1 + $0x81] sm:$0x4] %vm8_vm0, %v42_v63   ;;  %786 = vst.msk [vmem:[%s2191_s1 + $0xc0] sm:$0x8] %vm8_vm0, %v42_v63   ;;  %v30_v2 = vpop.permute.xlu0 %29  }
  0x81   :  { %v54_v3 = vpop.permute.xlu1 %53   ;;  %779 = vst.msk [vmem:[%s2191_s1 + $0x2] sm:$0x1] %vm8_vm0, %v30_v2   ;;  %780 = vst.msk [vmem:[%s2191_s1 + $0x41] sm:$0x2] %vm8_vm0, %v30_v2  }
  0x82   :  { %781 = vst.msk [vmem:[%s2191_s1 + $0x80] sm:$0x4] %vm8_vm0, %v30_v2   ;;  %782 = vst.msk [vmem:[%s2191_s1 + $0xbf] sm:$0x8] %vm8_vm0, %v30_v2   ;;  %737 = vrot.lane.b32.xlu0 %v736_v0, %s1150_s17 }
  0x83   :  { %787 = vst.msk [vmem:[%s2191_s1 + $0x4] sm:$0x1] %vm8_vm0, %v54_v3   ;;  %788 = vst.msk [vmem:[%s2191_s1 + $0x43] sm:$0x2] %vm8_vm0, %v54_v3   ;;  %749 = vrot.lane.b32.xlu1 %v748_v1, %s1151_s18 }
  0x84   :  { %789 = vst.msk [vmem:[%s2191_s1 + $0x82] sm:$0x4] %vm8_vm0, %v54_v3   ;;  %790 = vst.msk [vmem:[%s2191_s1 + $0xc1] sm:$0x8] %vm8_vm0, %v54_v3   ;;  %v66_v5 = vpop.permute.xlu0 %65  }
  0x85   :  { %v78_v6 = vpop.permute.xlu1 %77   ;;  %791 = vst.msk [vmem:[%s2191_s1 + $0x5] sm:$0x1] %vm8_vm0, %v66_v5   ;;  %792 = vst.msk [vmem:[%s2191_s1 + $0x44] sm:$0x2] %vm8_vm0, %v66_v5  }
  0x86   :  { %793 = vst.msk [vmem:[%s2191_s1 + $0x83] sm:$0x4] %vm8_vm0, %v66_v5   ;;  %794 = vst.msk [vmem:[%s2191_s1 + $0xc2] sm:$0x8] %vm8_vm0, %v66_v5   ;;  %761 = vrot.lane.b32.xlu0 %v760_v4, %s1152_s6 }
  0x87   :  { %795 = vst.msk [vmem:[%s2191_s1 + $0x6] sm:$0x1] %vm8_vm0, %v78_v6   ;;  %796 = vst.msk [vmem:[%s2191_s1 + $0x45] sm:$0x2] %vm8_vm0, %v78_v6  }
  0x88   :  { %797 = vst.msk [vmem:[%s2191_s1 + $0x84] sm:$0x4] %vm8_vm0, %v78_v6   ;;  %798 = vst.msk [vmem:[%s2191_s1 + $0xc3] sm:$0x8] %vm8_vm0, %v78_v6   ;;  %v90_v7 = vpop.permute.xlu0 %89  }
  0x89   :  { %v102_v8 = vpop.permute.xlu1 %101   ;;  %799 = vst.msk [vmem:[%s2191_s1 + $0x7] sm:$0x1] %vm8_vm0, %v90_v7   ;;  %800 = vst.msk [vmem:[%s2191_s1 + $0x46] sm:$0x2] %vm8_vm0, %v90_v7  }
  0x8a   :  { %801 = vst.msk [vmem:[%s2191_s1 + $0x85] sm:$0x4] %vm8_vm0, %v90_v7   ;;  %802 = vst.msk [vmem:[%s2191_s1 + $0xc4] sm:$0x8] %vm8_vm0, %v90_v7  }
  0x8b   :  { %803 = vst.msk [vmem:[%s2191_s1 + $0x8] sm:$0x1] %vm8_vm0, %v102_v8   ;;  %804 = vst.msk [vmem:[%s2191_s1 + $0x47] sm:$0x2] %vm8_vm0, %v102_v8  }
  0x8c   :  { %805 = vst.msk [vmem:[%s2191_s1 + $0x86] sm:$0x4] %vm8_vm0, %v102_v8   ;;  %806 = vst.msk [vmem:[%s2191_s1 + $0xc5] sm:$0x8] %vm8_vm0, %v102_v8   ;;  %v114_v9 = vpop.permute.xlu0 %113  }
  0x8d   :  { %v126_v10 = vpop.permute.xlu1 %125   ;;  %807 = vst.msk [vmem:[%s2191_s1 + $0x9] sm:$0x1] %vm8_vm0, %v114_v9   ;;  %808 = vst.msk [vmem:[%s2191_s1 + $0x48] sm:$0x2] %vm8_vm0, %v114_v9  }
  0x8e   :  { %809 = vst.msk [vmem:[%s2191_s1 + $0x87] sm:$0x4] %vm8_vm0, %v114_v9   ;;  %810 = vst.msk [vmem:[%s2191_s1 + $0xc6] sm:$0x8] %vm8_vm0, %v114_v9  }
  0x8f   :  { %811 = vst.msk [vmem:[%s2191_s1 + $0xa] sm:$0x1] %vm8_vm0, %v126_v10   ;;  %812 = vst.msk [vmem:[%s2191_s1 + $0x49] sm:$0x2] %vm8_vm0, %v126_v10  }
  0x90   :  { %813 = vst.msk [vmem:[%s2191_s1 + $0x88] sm:$0x4] %vm8_vm0, %v126_v10   ;;  %814 = vst.msk [vmem:[%s2191_s1 + $0xc7] sm:$0x8] %vm8_vm0, %v126_v10   ;;  %v138_v11 = vpop.permute.xlu0 %137  }
  0x91   :  { %v150_v12 = vpop.permute.xlu1 %149   ;;  %815 = vst.msk [vmem:[%s2191_s1 + $0xb] sm:$0x1] %vm8_vm0, %v138_v11   ;;  %816 = vst.msk [vmem:[%s2191_s1 + $0x4a] sm:$0x2] %vm8_vm0, %v138_v11  }
  0x92   :  { %817 = vst.msk [vmem:[%s2191_s1 + $0x89] sm:$0x4] %vm8_vm0, %v138_v11   ;;  %818 = vst.msk [vmem:[%s2191_s1 + $0xc8] sm:$0x8] %vm8_vm0, %v138_v11  }
  0x93   :  { %819 = vst.msk [vmem:[%s2191_s1 + $0xc] sm:$0x1] %vm8_vm0, %v150_v12   ;;  %820 = vst.msk [vmem:[%s2191_s1 + $0x4b] sm:$0x2] %vm8_vm0, %v150_v12  }
  0x94   :  { %821 = vst.msk [vmem:[%s2191_s1 + $0x8a] sm:$0x4] %vm8_vm0, %v150_v12   ;;  %822 = vst.msk [vmem:[%s2191_s1 + $0xc9] sm:$0x8] %vm8_vm0, %v150_v12   ;;  %v162_v13 = vpop.permute.xlu0 %161  }
  0x95   :  { %v174_v14 = vpop.permute.xlu1 %173   ;;  %823 = vst.msk [vmem:[%s2191_s1 + $0xd] sm:$0x1] %vm8_vm0, %v162_v13   ;;  %824 = vst.msk [vmem:[%s2191_s1 + $0x4c] sm:$0x2] %vm8_vm0, %v162_v13  }
  0x96   :  { %825 = vst.msk [vmem:[%s2191_s1 + $0x8b] sm:$0x4] %vm8_vm0, %v162_v13   ;;  %826 = vst.msk [vmem:[%s2191_s1 + $0xca] sm:$0x8] %vm8_vm0, %v162_v13  }
  0x97   :  { %827 = vst.msk [vmem:[%s2191_s1 + $0xe] sm:$0x1] %vm8_vm0, %v174_v14   ;;  %828 = vst.msk [vmem:[%s2191_s1 + $0x4d] sm:$0x2] %vm8_vm0, %v174_v14  }
  0x98   :  { %829 = vst.msk [vmem:[%s2191_s1 + $0x8c] sm:$0x4] %vm8_vm0, %v174_v14   ;;  %830 = vst.msk [vmem:[%s2191_s1 + $0xcb] sm:$0x8] %vm8_vm0, %v174_v14   ;;  %v186_v15 = vpop.permute.xlu0 %185  }
  0x99   :  { %v198_v16 = vpop.permute.xlu1 %197   ;;  %831 = vst.msk [vmem:[%s2191_s1 + $0xf] sm:$0x1] %vm8_vm0, %v186_v15   ;;  %832 = vst.msk [vmem:[%s2191_s1 + $0x4e] sm:$0x2] %vm8_vm0, %v186_v15  }
  0x9a   :  { %833 = vst.msk [vmem:[%s2191_s1 + $0x8d] sm:$0x4] %vm8_vm0, %v186_v15   ;;  %834 = vst.msk [vmem:[%s2191_s1 + $0xcc] sm:$0x8] %vm8_vm0, %v186_v15  }
  0x9b   :  { %835 = vst.msk [vmem:[%s2191_s1 + $0x10] sm:$0x1] %vm8_vm0, %v198_v16   ;;  %836 = vst.msk [vmem:[%s2191_s1 + $0x4f] sm:$0x2] %vm8_vm0, %v198_v16  }
  0x9c   :  { %837 = vst.msk [vmem:[%s2191_s1 + $0x8e] sm:$0x4] %vm8_vm0, %v198_v16   ;;  %838 = vst.msk [vmem:[%s2191_s1 + $0xcd] sm:$0x8] %vm8_vm0, %v198_v16   ;;  %v210_v17 = vpop.permute.xlu0 %209  }
  0x9d   :  { %v222_v18 = vpop.permute.xlu1 %221   ;;  %839 = vst.msk [vmem:[%s2191_s1 + $0x11] sm:$0x1] %vm8_vm0, %v210_v17   ;;  %840 = vst.msk [vmem:[%s2191_s1 + $0x50] sm:$0x2] %vm8_vm0, %v210_v17  }
  0x9e   :  { %841 = vst.msk [vmem:[%s2191_s1 + $0x8f] sm:$0x4] %vm8_vm0, %v210_v17   ;;  %842 = vst.msk [vmem:[%s2191_s1 + $0xce] sm:$0x8] %vm8_vm0, %v210_v17  }
  0x9f   :  { %843 = vst.msk [vmem:[%s2191_s1 + $0x12] sm:$0x1] %vm8_vm0, %v222_v18   ;;  %844 = vst.msk [vmem:[%s2191_s1 + $0x51] sm:$0x2] %vm8_vm0, %v222_v18  }
  0xa0   :  { %845 = vst.msk [vmem:[%s2191_s1 + $0x90] sm:$0x4] %vm8_vm0, %v222_v18   ;;  %846 = vst.msk [vmem:[%s2191_s1 + $0xcf] sm:$0x8] %vm8_vm0, %v222_v18   ;;  %v234_v19 = vpop.permute.xlu0 %233  }
  0xa1   :  { %v246_v20 = vpop.permute.xlu1 %245   ;;  %847 = vst.msk [vmem:[%s2191_s1 + $0x13] sm:$0x1] %vm8_vm0, %v234_v19   ;;  %848 = vst.msk [vmem:[%s2191_s1 + $0x52] sm:$0x2] %vm8_vm0, %v234_v19  }
  0xa2   :  { %849 = vst.msk [vmem:[%s2191_s1 + $0x91] sm:$0x4] %vm8_vm0, %v234_v19   ;;  %850 = vst.msk [vmem:[%s2191_s1 + $0xd0] sm:$0x8] %vm8_vm0, %v234_v19  }
  0xa3   :  { %851 = vst.msk [vmem:[%s2191_s1 + $0x14] sm:$0x1] %vm8_vm0, %v246_v20   ;;  %852 = vst.msk [vmem:[%s2191_s1 + $0x53] sm:$0x2] %vm8_vm0, %v246_v20  }
  0xa4   :  { %853 = vst.msk [vmem:[%s2191_s1 + $0x92] sm:$0x4] %vm8_vm0, %v246_v20   ;;  %854 = vst.msk [vmem:[%s2191_s1 + $0xd1] sm:$0x8] %vm8_vm0, %v246_v20   ;;  %v258_v21 = vpop.permute.xlu0 %257  }
  0xa5   :  { %v270_v22 = vpop.permute.xlu1 %269   ;;  %855 = vst.msk [vmem:[%s2191_s1 + $0x15] sm:$0x1] %vm8_vm0, %v258_v21   ;;  %856 = vst.msk [vmem:[%s2191_s1 + $0x54] sm:$0x2] %vm8_vm0, %v258_v21  }
  0xa6   :  { %857 = vst.msk [vmem:[%s2191_s1 + $0x93] sm:$0x4] %vm8_vm0, %v258_v21   ;;  %858 = vst.msk [vmem:[%s2191_s1 + $0xd2] sm:$0x8] %vm8_vm0, %v258_v21  }
  0xa7   :  { %859 = vst.msk [vmem:[%s2191_s1 + $0x16] sm:$0x1] %vm8_vm0, %v270_v22   ;;  %860 = vst.msk [vmem:[%s2191_s1 + $0x55] sm:$0x2] %vm8_vm0, %v270_v22  }
  0xa8   :  { %861 = vst.msk [vmem:[%s2191_s1 + $0x94] sm:$0x4] %vm8_vm0, %v270_v22   ;;  %862 = vst.msk [vmem:[%s2191_s1 + $0xd3] sm:$0x8] %vm8_vm0, %v270_v22   ;;  %v282_v23 = vpop.permute.xlu0 %281  }
  0xa9   :  { %v294_v24 = vpop.permute.xlu1 %293   ;;  %863 = vst.msk [vmem:[%s2191_s1 + $0x17] sm:$0x1] %vm8_vm0, %v282_v23   ;;  %864 = vst.msk [vmem:[%s2191_s1 + $0x56] sm:$0x2] %vm8_vm0, %v282_v23  }
  0xaa   :  { %865 = vst.msk [vmem:[%s2191_s1 + $0x95] sm:$0x4] %vm8_vm0, %v282_v23   ;;  %866 = vst.msk [vmem:[%s2191_s1 + $0xd4] sm:$0x8] %vm8_vm0, %v282_v23  }
  0xab   :  { %867 = vst.msk [vmem:[%s2191_s1 + $0x18] sm:$0x1] %vm8_vm0, %v294_v24   ;;  %868 = vst.msk [vmem:[%s2191_s1 + $0x57] sm:$0x2] %vm8_vm0, %v294_v24  }
  0xac   :  { %869 = vst.msk [vmem:[%s2191_s1 + $0x96] sm:$0x4] %vm8_vm0, %v294_v24   ;;  %870 = vst.msk [vmem:[%s2191_s1 + $0xd5] sm:$0x8] %vm8_vm0, %v294_v24   ;;  %v306_v25 = vpop.permute.xlu0 %305  }
  0xad   :  { %v318_v26 = vpop.permute.xlu1 %317   ;;  %871 = vst.msk [vmem:[%s2191_s1 + $0x19] sm:$0x1] %vm8_vm0, %v306_v25   ;;  %872 = vst.msk [vmem:[%s2191_s1 + $0x58] sm:$0x2] %vm8_vm0, %v306_v25  }
  0xae   :  { %873 = vst.msk [vmem:[%s2191_s1 + $0x97] sm:$0x4] %vm8_vm0, %v306_v25   ;;  %874 = vst.msk [vmem:[%s2191_s1 + $0xd6] sm:$0x8] %vm8_vm0, %v306_v25  }
  0xaf   :  { %875 = vst.msk [vmem:[%s2191_s1 + $0x1a] sm:$0x1] %vm8_vm0, %v318_v26   ;;  %876 = vst.msk [vmem:[%s2191_s1 + $0x59] sm:$0x2] %vm8_vm0, %v318_v26  }
  0xb0   :  { %877 = vst.msk [vmem:[%s2191_s1 + $0x98] sm:$0x4] %vm8_vm0, %v318_v26   ;;  %878 = vst.msk [vmem:[%s2191_s1 + $0xd7] sm:$0x8] %vm8_vm0, %v318_v26   ;;  %v330_v27 = vpop.permute.xlu0 %329  }
  0xb1   :  { %v342_v28 = vpop.permute.xlu1 %341   ;;  %879 = vst.msk [vmem:[%s2191_s1 + $0x1b] sm:$0x1] %vm8_vm0, %v330_v27   ;;  %880 = vst.msk [vmem:[%s2191_s1 + $0x5a] sm:$0x2] %vm8_vm0, %v330_v27  }
  0xb2   :  { %881 = vst.msk [vmem:[%s2191_s1 + $0x99] sm:$0x4] %vm8_vm0, %v330_v27   ;;  %882 = vst.msk [vmem:[%s2191_s1 + $0xd8] sm:$0x8] %vm8_vm0, %v330_v27  }
  0xb3   :  { %883 = vst.msk [vmem:[%s2191_s1 + $0x1c] sm:$0x1] %vm8_vm0, %v342_v28   ;;  %884 = vst.msk [vmem:[%s2191_s1 + $0x5b] sm:$0x2] %vm8_vm0, %v342_v28  }
  0xb4   :  { %885 = vst.msk [vmem:[%s2191_s1 + $0x9a] sm:$0x4] %vm8_vm0, %v342_v28   ;;  %886 = vst.msk [vmem:[%s2191_s1 + $0xd9] sm:$0x8] %vm8_vm0, %v342_v28   ;;  %v354_v29 = vpop.permute.xlu0 %353  }
  0xb5   :  { %v366_v30 = vpop.permute.xlu1 %365   ;;  %887 = vst.msk [vmem:[%s2191_s1 + $0x1d] sm:$0x1] %vm8_vm0, %v354_v29   ;;  %888 = vst.msk [vmem:[%s2191_s1 + $0x5c] sm:$0x2] %vm8_vm0, %v354_v29  }
  0xb6   :  { %889 = vst.msk [vmem:[%s2191_s1 + $0x9b] sm:$0x4] %vm8_vm0, %v354_v29   ;;  %890 = vst.msk [vmem:[%s2191_s1 + $0xda] sm:$0x8] %vm8_vm0, %v354_v29  }
  0xb7   :  { %891 = vst.msk [vmem:[%s2191_s1 + $0x1e] sm:$0x1] %vm8_vm0, %v366_v30   ;;  %892 = vst.msk [vmem:[%s2191_s1 + $0x5d] sm:$0x2] %vm8_vm0, %v366_v30  }
  0xb8   :  { %893 = vst.msk [vmem:[%s2191_s1 + $0x9c] sm:$0x4] %vm8_vm0, %v366_v30   ;;  %894 = vst.msk [vmem:[%s2191_s1 + $0xdb] sm:$0x8] %vm8_vm0, %v366_v30   ;;  %v378_v31 = vpop.permute.xlu0 %377  }
  0xb9   :  { %v390_v32 = vpop.permute.xlu1 %389   ;;  %895 = vst.msk [vmem:[%s2191_s1 + $0x1f] sm:$0x1] %vm8_vm0, %v378_v31   ;;  %896 = vst.msk [vmem:[%s2191_s1 + $0x5e] sm:$0x2] %vm8_vm0, %v378_v31  }
  0xba   :  { %897 = vst.msk [vmem:[%s2191_s1 + $0x9d] sm:$0x4] %vm8_vm0, %v378_v31   ;;  %898 = vst.msk [vmem:[%s2191_s1 + $0xdc] sm:$0x8] %vm8_vm0, %v378_v31  }
  0xbb   :  { %899 = vst.msk [vmem:[%s2191_s1 + $0x20] sm:$0x1] %vm8_vm0, %v390_v32   ;;  %900 = vst.msk [vmem:[%s2191_s1 + $0x5f] sm:$0x2] %vm8_vm0, %v390_v32  }
  0xbc   :  { %901 = vst.msk [vmem:[%s2191_s1 + $0x9e] sm:$0x4] %vm8_vm0, %v390_v32   ;;  %902 = vst.msk [vmem:[%s2191_s1 + $0xdd] sm:$0x8] %vm8_vm0, %v390_v32   ;;  %v402_v33 = vpop.permute.xlu0 %401  }
  0xbd   :  { %v414_v34 = vpop.permute.xlu1 %413   ;;  %903 = vst.msk [vmem:[%s2191_s1 + $0x21] sm:$0x1] %vm8_vm0, %v402_v33   ;;  %904 = vst.msk [vmem:[%s2191_s1 + $0x60] sm:$0x2] %vm8_vm0, %v402_v33  }
  0xbe   :  { %905 = vst.msk [vmem:[%s2191_s1 + $0x9f] sm:$0x4] %vm8_vm0, %v402_v33   ;;  %906 = vst.msk [vmem:[%s2191_s1 + $0xde] sm:$0x8] %vm8_vm0, %v402_v33  }
  0xbf   :  { %907 = vst.msk [vmem:[%s2191_s1 + $0x22] sm:$0x1] %vm8_vm0, %v414_v34   ;;  %908 = vst.msk [vmem:[%s2191_s1 + $0x61] sm:$0x2] %vm8_vm0, %v414_v34  }
  0xc0   :  { %909 = vst.msk [vmem:[%s2191_s1 + $0xa0] sm:$0x4] %vm8_vm0, %v414_v34   ;;  %910 = vst.msk [vmem:[%s2191_s1 + $0xdf] sm:$0x8] %vm8_vm0, %v414_v34   ;;  %v426_v35 = vpop.permute.xlu0 %425  }
  0xc1   :  { %v438_v36 = vpop.permute.xlu1 %437   ;;  %911 = vst.msk [vmem:[%s2191_s1 + $0x23] sm:$0x1] %vm8_vm0, %v426_v35   ;;  %912 = vst.msk [vmem:[%s2191_s1 + $0x62] sm:$0x2] %vm8_vm0, %v426_v35  }
  0xc2   :  { %913 = vst.msk [vmem:[%s2191_s1 + $0xa1] sm:$0x4] %vm8_vm0, %v426_v35   ;;  %914 = vst.msk [vmem:[%s2191_s1 + $0xe0] sm:$0x8] %vm8_vm0, %v426_v35  }
  0xc3   :  { %915 = vst.msk [vmem:[%s2191_s1 + $0x24] sm:$0x1] %vm8_vm0, %v438_v36   ;;  %916 = vst.msk [vmem:[%s2191_s1 + $0x63] sm:$0x2] %vm8_vm0, %v438_v36  }
  0xc4   :  { %917 = vst.msk [vmem:[%s2191_s1 + $0xa2] sm:$0x4] %vm8_vm0, %v438_v36   ;;  %918 = vst.msk [vmem:[%s2191_s1 + $0xe1] sm:$0x8] %vm8_vm0, %v438_v36   ;;  %v450_v37 = vpop.permute.xlu0 %449  }
  0xc5   :  { %v462_v38 = vpop.permute.xlu1 %461   ;;  %919 = vst.msk [vmem:[%s2191_s1 + $0x25] sm:$0x1] %vm8_vm0, %v450_v37   ;;  %920 = vst.msk [vmem:[%s2191_s1 + $0x64] sm:$0x2] %vm8_vm0, %v450_v37  }
  0xc6   :  { %921 = vst.msk [vmem:[%s2191_s1 + $0xa3] sm:$0x4] %vm8_vm0, %v450_v37   ;;  %922 = vst.msk [vmem:[%s2191_s1 + $0xe2] sm:$0x8] %vm8_vm0, %v450_v37  }
  0xc7   :  { %923 = vst.msk [vmem:[%s2191_s1 + $0x26] sm:$0x1] %vm8_vm0, %v462_v38   ;;  %924 = vst.msk [vmem:[%s2191_s1 + $0x65] sm:$0x2] %vm8_vm0, %v462_v38  }
  0xc8   :  { %925 = vst.msk [vmem:[%s2191_s1 + $0xa4] sm:$0x4] %vm8_vm0, %v462_v38   ;;  %926 = vst.msk [vmem:[%s2191_s1 + $0xe3] sm:$0x8] %vm8_vm0, %v462_v38   ;;  %v474_v39 = vpop.permute.xlu0 %473  }
  0xc9   :  { %v486_v40 = vpop.permute.xlu1 %485   ;;  %927 = vst.msk [vmem:[%s2191_s1 + $0x27] sm:$0x1] %vm8_vm0, %v474_v39   ;;  %928 = vst.msk [vmem:[%s2191_s1 + $0x66] sm:$0x2] %vm8_vm0, %v474_v39  }
  0xca   :  { %929 = vst.msk [vmem:[%s2191_s1 + $0xa5] sm:$0x4] %vm8_vm0, %v474_v39   ;;  %930 = vst.msk [vmem:[%s2191_s1 + $0xe4] sm:$0x8] %vm8_vm0, %v474_v39  }
  0xcb   :  { %931 = vst.msk [vmem:[%s2191_s1 + $0x28] sm:$0x1] %vm8_vm0, %v486_v40   ;;  %932 = vst.msk [vmem:[%s2191_s1 + $0x67] sm:$0x2] %vm8_vm0, %v486_v40  }
  0xcc   :  { %933 = vst.msk [vmem:[%s2191_s1 + $0xa6] sm:$0x4] %vm8_vm0, %v486_v40   ;;  %934 = vst.msk [vmem:[%s2191_s1 + $0xe5] sm:$0x8] %vm8_vm0, %v486_v40   ;;  %v498_v41 = vpop.permute.xlu0 %497  }
  0xcd   :  { %v510_v42 = vpop.permute.xlu1 %509   ;;  %935 = vst.msk [vmem:[%s2191_s1 + $0x29] sm:$0x1] %vm8_vm0, %v498_v41   ;;  %936 = vst.msk [vmem:[%s2191_s1 + $0x68] sm:$0x2] %vm8_vm0, %v498_v41  }
  0xce   :  { %937 = vst.msk [vmem:[%s2191_s1 + $0xa7] sm:$0x4] %vm8_vm0, %v498_v41   ;;  %938 = vst.msk [vmem:[%s2191_s1 + $0xe6] sm:$0x8] %vm8_vm0, %v498_v41  }
  0xcf   :  { %939 = vst.msk [vmem:[%s2191_s1 + $0x2a] sm:$0x1] %vm8_vm0, %v510_v42   ;;  %940 = vst.msk [vmem:[%s2191_s1 + $0x69] sm:$0x2] %vm8_vm0, %v510_v42  }
  0xd0   :  { %941 = vst.msk [vmem:[%s2191_s1 + $0xa8] sm:$0x4] %vm8_vm0, %v510_v42   ;;  %942 = vst.msk [vmem:[%s2191_s1 + $0xe7] sm:$0x8] %vm8_vm0, %v510_v42   ;;  %v522_v43 = vpop.permute.xlu0 %521  }
  0xd1   :  { %v534_v44 = vpop.permute.xlu1 %533   ;;  %943 = vst.msk [vmem:[%s2191_s1 + $0x2b] sm:$0x1] %vm8_vm0, %v522_v43   ;;  %944 = vst.msk [vmem:[%s2191_s1 + $0x6a] sm:$0x2] %vm8_vm0, %v522_v43  }
  0xd2   :  { %945 = vst.msk [vmem:[%s2191_s1 + $0xa9] sm:$0x4] %vm8_vm0, %v522_v43   ;;  %946 = vst.msk [vmem:[%s2191_s1 + $0xe8] sm:$0x8] %vm8_vm0, %v522_v43  }
  0xd3   :  { %947 = vst.msk [vmem:[%s2191_s1 + $0x2c] sm:$0x1] %vm8_vm0, %v534_v44   ;;  %948 = vst.msk [vmem:[%s2191_s1 + $0x6b] sm:$0x2] %vm8_vm0, %v534_v44  }
  0xd4   :  { %949 = vst.msk [vmem:[%s2191_s1 + $0xaa] sm:$0x4] %vm8_vm0, %v534_v44   ;;  %950 = vst.msk [vmem:[%s2191_s1 + $0xe9] sm:$0x8] %vm8_vm0, %v534_v44   ;;  %v546_v45 = vpop.permute.xlu0 %545  }
  0xd5   :  { %v558_v46 = vpop.permute.xlu1 %557   ;;  %951 = vst.msk [vmem:[%s2191_s1 + $0x2d] sm:$0x1] %vm8_vm0, %v546_v45   ;;  %952 = vst.msk [vmem:[%s2191_s1 + $0x6c] sm:$0x2] %vm8_vm0, %v546_v45  }
  0xd6   :  { %953 = vst.msk [vmem:[%s2191_s1 + $0xab] sm:$0x4] %vm8_vm0, %v546_v45   ;;  %954 = vst.msk [vmem:[%s2191_s1 + $0xea] sm:$0x8] %vm8_vm0, %v546_v45  }
  0xd7   :  { %955 = vst.msk [vmem:[%s2191_s1 + $0x2e] sm:$0x1] %vm8_vm0, %v558_v46   ;;  %956 = vst.msk [vmem:[%s2191_s1 + $0x6d] sm:$0x2] %vm8_vm0, %v558_v46  }
  0xd8   :  { %957 = vst.msk [vmem:[%s2191_s1 + $0xac] sm:$0x4] %vm8_vm0, %v558_v46   ;;  %958 = vst.msk [vmem:[%s2191_s1 + $0xeb] sm:$0x8] %vm8_vm0, %v558_v46   ;;  %v570_v47 = vpop.permute.xlu0 %569  }
  0xd9   :  { %v582_v48 = vpop.permute.xlu1 %581   ;;  %959 = vst.msk [vmem:[%s2191_s1 + $0x2f] sm:$0x1] %vm8_vm0, %v570_v47   ;;  %960 = vst.msk [vmem:[%s2191_s1 + $0x6e] sm:$0x2] %vm8_vm0, %v570_v47  }
  0xda   :  { %961 = vst.msk [vmem:[%s2191_s1 + $0xad] sm:$0x4] %vm8_vm0, %v570_v47   ;;  %962 = vst.msk [vmem:[%s2191_s1 + $0xec] sm:$0x8] %vm8_vm0, %v570_v47  }
  0xdb   :  { %963 = vst.msk [vmem:[%s2191_s1 + $0x30] sm:$0x1] %vm8_vm0, %v582_v48   ;;  %964 = vst.msk [vmem:[%s2191_s1 + $0x6f] sm:$0x2] %vm8_vm0, %v582_v48  }
  0xdc   :  { %965 = vst.msk [vmem:[%s2191_s1 + $0xae] sm:$0x4] %vm8_vm0, %v582_v48   ;;  %966 = vst.msk [vmem:[%s2191_s1 + $0xed] sm:$0x8] %vm8_vm0, %v582_v48   ;;  %v594_v49 = vpop.permute.xlu0 %593  }
  0xdd   :  { %v606_v50 = vpop.permute.xlu1 %605   ;;  %967 = vst.msk [vmem:[%s2191_s1 + $0x31] sm:$0x1] %vm8_vm0, %v594_v49   ;;  %968 = vst.msk [vmem:[%s2191_s1 + $0x70] sm:$0x2] %vm8_vm0, %v594_v49  }
  0xde   :  { %969 = vst.msk [vmem:[%s2191_s1 + $0xaf] sm:$0x4] %vm8_vm0, %v594_v49   ;;  %970 = vst.msk [vmem:[%s2191_s1 + $0xee] sm:$0x8] %vm8_vm0, %v594_v49  }
  0xdf   :  { %971 = vst.msk [vmem:[%s2191_s1 + $0x32] sm:$0x1] %vm8_vm0, %v606_v50   ;;  %972 = vst.msk [vmem:[%s2191_s1 + $0x71] sm:$0x2] %vm8_vm0, %v606_v50  }
  0xe0   :  { %973 = vst.msk [vmem:[%s2191_s1 + $0xb0] sm:$0x4] %vm8_vm0, %v606_v50   ;;  %974 = vst.msk [vmem:[%s2191_s1 + $0xef] sm:$0x8] %vm8_vm0, %v606_v50   ;;  %v618_v51 = vpop.permute.xlu0 %617  }
  0xe1   :  { %v630_v52 = vpop.permute.xlu1 %629   ;;  %975 = vst.msk [vmem:[%s2191_s1 + $0x33] sm:$0x1] %vm8_vm0, %v618_v51   ;;  %976 = vst.msk [vmem:[%s2191_s1 + $0x72] sm:$0x2] %vm8_vm0, %v618_v51  }
  0xe2   :  { %977 = vst.msk [vmem:[%s2191_s1 + $0xb1] sm:$0x4] %vm8_vm0, %v618_v51   ;;  %978 = vst.msk [vmem:[%s2191_s1 + $0xf0] sm:$0x8] %vm8_vm0, %v618_v51  }
  0xe3   :  { %979 = vst.msk [vmem:[%s2191_s1 + $0x34] sm:$0x1] %vm8_vm0, %v630_v52   ;;  %980 = vst.msk [vmem:[%s2191_s1 + $0x73] sm:$0x2] %vm8_vm0, %v630_v52  }
  0xe4   :  { %981 = vst.msk [vmem:[%s2191_s1 + $0xb2] sm:$0x4] %vm8_vm0, %v630_v52   ;;  %982 = vst.msk [vmem:[%s2191_s1 + $0xf1] sm:$0x8] %vm8_vm0, %v630_v52   ;;  %v642_v53 = vpop.permute.xlu0 %641  }
  0xe5   :  { %v654_v54 = vpop.permute.xlu1 %653   ;;  %983 = vst.msk [vmem:[%s2191_s1 + $0x35] sm:$0x1] %vm8_vm0, %v642_v53   ;;  %984 = vst.msk [vmem:[%s2191_s1 + $0x74] sm:$0x2] %vm8_vm0, %v642_v53  }
  0xe6   :  { %985 = vst.msk [vmem:[%s2191_s1 + $0xb3] sm:$0x4] %vm8_vm0, %v642_v53   ;;  %986 = vst.msk [vmem:[%s2191_s1 + $0xf2] sm:$0x8] %vm8_vm0, %v642_v53  }
  0xe7   :  { %987 = vst.msk [vmem:[%s2191_s1 + $0x36] sm:$0x1] %vm8_vm0, %v654_v54   ;;  %988 = vst.msk [vmem:[%s2191_s1 + $0x75] sm:$0x2] %vm8_vm0, %v654_v54  }
  0xe8   :  { %989 = vst.msk [vmem:[%s2191_s1 + $0xb4] sm:$0x4] %vm8_vm0, %v654_v54   ;;  %990 = vst.msk [vmem:[%s2191_s1 + $0xf3] sm:$0x8] %vm8_vm0, %v654_v54   ;;  %v666_v55 = vpop.permute.xlu0 %665  }
  0xe9   :  { %v678_v56 = vpop.permute.xlu1 %677   ;;  %991 = vst.msk [vmem:[%s2191_s1 + $0x37] sm:$0x1] %vm8_vm0, %v666_v55   ;;  %992 = vst.msk [vmem:[%s2191_s1 + $0x76] sm:$0x2] %vm8_vm0, %v666_v55  }
  0xea   :  { %993 = vst.msk [vmem:[%s2191_s1 + $0xb5] sm:$0x4] %vm8_vm0, %v666_v55   ;;  %994 = vst.msk [vmem:[%s2191_s1 + $0xf4] sm:$0x8] %vm8_vm0, %v666_v55  }
  0xeb   :  { %995 = vst.msk [vmem:[%s2191_s1 + $0x38] sm:$0x1] %vm8_vm0, %v678_v56   ;;  %996 = vst.msk [vmem:[%s2191_s1 + $0x77] sm:$0x2] %vm8_vm0, %v678_v56  }
  0xec   :  { %997 = vst.msk [vmem:[%s2191_s1 + $0xb6] sm:$0x4] %vm8_vm0, %v678_v56   ;;  %998 = vst.msk [vmem:[%s2191_s1 + $0xf5] sm:$0x8] %vm8_vm0, %v678_v56   ;;  %v690_v57 = vpop.permute.xlu0 %689  }
  0xed   :  { %v702_v58 = vpop.permute.xlu1 %701   ;;  %999 = vst.msk [vmem:[%s2191_s1 + $0x39] sm:$0x1] %vm8_vm0, %v690_v57   ;;  %1000 = vst.msk [vmem:[%s2191_s1 + $0x78] sm:$0x2] %vm8_vm0, %v690_v57  }
  0xee   :  { %1001 = vst.msk [vmem:[%s2191_s1 + $0xb7] sm:$0x4] %vm8_vm0, %v690_v57   ;;  %1002 = vst.msk [vmem:[%s2191_s1 + $0xf6] sm:$0x8] %vm8_vm0, %v690_v57  }
  0xef   :  { %1003 = vst.msk [vmem:[%s2191_s1 + $0x3a] sm:$0x1] %vm8_vm0, %v702_v58   ;;  %1004 = vst.msk [vmem:[%s2191_s1 + $0x79] sm:$0x2] %vm8_vm0, %v702_v58  }
  0xf0   :  { %1005 = vst.msk [vmem:[%s2191_s1 + $0xb8] sm:$0x4] %vm8_vm0, %v702_v58   ;;  %1006 = vst.msk [vmem:[%s2191_s1 + $0xf7] sm:$0x8] %vm8_vm0, %v702_v58   ;;  %v714_v59 = vpop.permute.xlu0 %713  }
  0xf1   :  { %v726_v60 = vpop.permute.xlu1 %725   ;;  %1007 = vst.msk [vmem:[%s2191_s1 + $0x3b] sm:$0x1] %vm8_vm0, %v714_v59   ;;  %1008 = vst.msk [vmem:[%s2191_s1 + $0x7a] sm:$0x2] %vm8_vm0, %v714_v59  }
  0xf2   :  { %1009 = vst.msk [vmem:[%s2191_s1 + $0xb9] sm:$0x4] %vm8_vm0, %v714_v59   ;;  %1010 = vst.msk [vmem:[%s2191_s1 + $0xf8] sm:$0x8] %vm8_vm0, %v714_v59  }
  0xf3   :  { %1011 = vst.msk [vmem:[%s2191_s1 + $0x3c] sm:$0x1] %vm8_vm0, %v726_v60   ;;  %1012 = vst.msk [vmem:[%s2191_s1 + $0x7b] sm:$0x2] %vm8_vm0, %v726_v60  }
  0xf4   :  { %1013 = vst.msk [vmem:[%s2191_s1 + $0xba] sm:$0x4] %vm8_vm0, %v726_v60   ;;  %1014 = vst.msk [vmem:[%s2191_s1 + $0xf9] sm:$0x8] %vm8_vm0, %v726_v60   ;;  %v738_v61 = vpop.permute.xlu0 %737  }
  0xf5   :  { %v750_v62 = vpop.permute.xlu1 %749   ;;  %1015 = vst.msk [vmem:[%s2191_s1 + $0x3d] sm:$0x1] %vm8_vm0, %v738_v61   ;;  %1016 = vst.msk [vmem:[%s2191_s1 + $0x7c] sm:$0x2] %vm8_vm0, %v738_v61  }
  0xf6   :  { %1017 = vst.msk [vmem:[%s2191_s1 + $0xbb] sm:$0x4] %vm8_vm0, %v738_v61   ;;  %1018 = vst.msk [vmem:[%s2191_s1 + $0xfa] sm:$0x8] %vm8_vm0, %v738_v61  }
  0xf7   :  { %1019 = vst.msk [vmem:[%s2191_s1 + $0x3e] sm:$0x1] %vm8_vm0, %v750_v62   ;;  %1020 = vst.msk [vmem:[%s2191_s1 + $0x7d] sm:$0x2] %vm8_vm0, %v750_v62  }
  0xf8   :  { %1021 = vst.msk [vmem:[%s2191_s1 + $0xbc] sm:$0x4] %vm8_vm0, %v750_v62   ;;  %1022 = vst.msk [vmem:[%s2191_s1 + $0xfb] sm:$0x8] %vm8_vm0, %v750_v62   ;;  %v762_v63 = vpop.permute.xlu0 %761  }
  0xf9   :  { %1023 = vst.msk [vmem:[%s2191_s1 + $0x3f] sm:$0x1] %vm8_vm0, %v762_v63   ;;  %1024 = vst.msk [vmem:[%s2191_s1 + $0x7e] sm:$0x2] %vm8_vm0, %v762_v63  }
  0xfa   :  { %1025 = vst.msk [vmem:[%s2191_s1 + $0xbd] sm:$0x4] %vm8_vm0, %v762_v63   ;;  %1026 = vst.msk [vmem:[%s2191_s1 + $0xfc] sm:$0x8] %vm8_vm0, %v762_v63  }

// kernel: a_call__.5
= control target key start
LH: loop header
LB: loop body
LE: loop exit
PB: predicated region body
PF: predicated region fallthrough
CT: control target
= control target key end

     0   :  { %7 = vsyncpa [#allocation3], 0  ;;  %s182_s0 = inlined_call_operand.vmem [shape: f32[4,4], index: 0, kind: input, shape index: {}]   ;;  %s183_s1 = inlined_call_operand.vmem [shape: f32[4,4,128], index: 1, kind: input, shape index: {}]   ;;  %s184_s2 = inlined_call_operand.vmem [shape: f32[4,4,128], index: 2, kind: output, shape index: {}]  }
   0x1   :  { %s14_s11 = sshll.u32 %s182_s0, 4  ;;  %s15_s11 = int_to_ptr.vmem [resolvable:$true] %s14_s11 }
   0x2   :  { %s125_s12 = scalar_lea.vmem %s15_s11, 64  ;;  %p130_p1 = scmp.lt.s32.totalorder %s15_s11, %s15_s11 }
   0x3   :  { %p126_p0 = scmp.ne.s32.totalorder %s15_s11, %s125_s12  ;;  %p131_p2 = scmp.lt.s32.totalorder %s125_s12, %s125_s12 }
   0x5   :  { %p132_p3 = por %p131_p2, %p130_p1 }
   0x7   :  { %p133_p4 = pnand %p132_p3, %p126_p0 }
   0x9   :  { %136 = shalt.err (!%p133_p4)
}
   0xa   :  { %s139_s13 = smov [#allocation2]  }
   0xb   :  { %17 = dma.vmem_to_smem %s15_s11, 64, %s139_s13, [#allocation3]  }
   0xc   :  { %137 = dma.done.wait [#allocation3], 64  }
   0xd   :  { %138 = vsyncadd [#allocation3], 4294967232 }
   0xe   :  { %23 = sfence }
   0xf   :  { %s31_s14 = sld [smem:[#allocation2]]  ;;  %v24_v0 = vld [vmem:[%s183_s1] sm:$0xf]  ;;  %v103_v1 = vld [vmem:[%s183_s1 + $0x4] sm:$0xf] }
  0x10   :  { %s106_s15 = sld [smem:[#allocation2 + $0x1]]  ;;  %v104_v2 = vld [vmem:[%s183_s1 + $0x8] sm:$0xf]  ;;  %v105_v4 = vld [vmem:[%s183_s1 + $0xc] sm:$0xf] }
  0x11   :  { %s107_s16 = sld [smem:[#allocation2 + $0x2]] }
  0x12   :  { %s108_s17 = sld [smem:[#allocation2 + $0x3]] }
  0x13   :  { %s109_s0 = sld [smem:[#allocation2 + $0x80]] }
  0x14   :  { %s110_s22 = sld [smem:[#allocation2 + $0x81]] }
  0x15   :  { %v32_v3 = vstv %s31_s14  ;;  %s111_s25 = sld [smem:[#allocation2 + $0x82]] }
  0x16   :  { %v33_v5 = vmul.f32 %v32_v3, %v24_v0  ;;  %v35_v6 = vstv %s106_s15  ;;  %s112_s28 = sld [smem:[#allocation2 + $0x83]] }
  0x17   :  { %v36_v7 = vmul.f32 %v103_v1, %v35_v6  ;;  %v39_v8 = vstv %s107_s16  ;;  %s114_s29 = sld [smem:[#allocation2 + $0x100]] }
  0x18   :  { %v40_v9 = vmul.f32 %v104_v2, %v39_v8  ;;  %v43_v10 = vstv %s108_s17  ;;  %s115_s30 = sld [smem:[#allocation2 + $0x101]] }
  0x19   :  { %v37_v11 = vadd.f32 %v36_v7, %v33_v5  ;;  %v44_v12 = vmul.f32 %v105_v4, %v43_v10  ;;  %v48_v13 = vstv %s109_s0  ;;  %s116_s3 = sld [smem:[#allocation2 + $0x102]] }
  0x1a   :  { %v49_v14 = vmul.f32 %v48_v13, %v24_v0  ;;  %v51_v15 = vstv %s110_s22  ;;  %s117_s4 = sld [smem:[#allocation2 + $0x103]] }
  0x1b   :  { %v41_v16 = vadd.f32 %v40_v9, %v37_v11  ;;  %v52_v17 = vmul.f32 %v103_v1, %v51_v15  ;;  %v55_v18 = vstv %s111_s25  ;;  %s119_s1 = sld [smem:[#allocation2 + $0x180]] }
  0x1c   :  { %v56_v19 = vmul.f32 %v104_v2, %v55_v18  ;;  %v59_v20 = vstv %s112_s28  ;;  %s120_s5 = sld [smem:[#allocation2 + $0x181]] }
  0x1d   :  { %v45_v21 = vadd.f32 %v44_v12, %v41_v16  ;;  %v53_v22 = vadd.f32 %v52_v17, %v49_v14  ;;  %v60_v23 = vmul.f32 %v105_v4, %v59_v20  ;;  %v65_v24 = vstv %s114_s29  ;;  %s121_s6 = sld [smem:[#allocation2 + $0x182]] }
  0x1e   :  { %v66_v25 = vmul.f32 %v65_v24, %v24_v0  ;;  %v68_v26 = vstv %s115_s30  ;;  %s122_s7 = sld [smem:[#allocation2 + $0x183]] }
  0x1f   :  { %46 = vst [vmem:[%s184_s2] sm:$0xf] %v45_v21  ;;  %v57_v27 = vadd.f32 %v56_v19, %v53_v22  ;;  %v69_v28 = vmul.f32 %v103_v1, %v68_v26  ;;  %v72_v29 = vstv %s116_s3 }
  0x20   :  { %v73_v30 = vmul.f32 %v104_v2, %v72_v29  ;;  %v76_v31 = vstv %s117_s4 }
  0x21   :  { %v61_v32 = vadd.f32 %v60_v23, %v57_v27  ;;  %v70_v33 = vadd.f32 %v69_v28, %v66_v25  ;;  %v77_v34 = vmul.f32 %v105_v4, %v76_v31  ;;  %v82_v35 = vstv %s119_s1 }
  0x22   :  { %v83_v36 = vmul.f32 %v82_v35, %v24_v0  ;;  %v85_v37 = vstv %s120_s5 }
  0x23   :  { %113 = vst [vmem:[%s184_s2 + $0x4] sm:$0xf] %v61_v32  ;;  %v74_v38 = vadd.f32 %v73_v30, %v70_v33  ;;  %v86_v39 = vmul.f32 %v103_v1, %v85_v37  ;;  %v89_v40 = vstv %s121_s6 }
  0x24   :  { %v90_v41 = vmul.f32 %v104_v2, %v89_v40  ;;  %v93_v42 = vstv %s122_s7 }
  0x25   :  { %v78_v43 = vadd.f32 %v77_v34, %v74_v38  ;;  %v87_v44 = vadd.f32 %v86_v39, %v83_v36  ;;  %v94_v45 = vmul.f32 %v105_v4, %v93_v42 }
  0x27   :  { %118 = vst [vmem:[%s184_s2 + $0x8] sm:$0xf] %v78_v43  ;;  %v91_v46 = vadd.f32 %v90_v41, %v87_v44 }
  0x29   :  { %v95_v47 = vadd.f32 %v94_v45, %v91_v46 }
  0x2b   :  { %123 = vst [vmem:[%s184_s2 + $0xc] sm:$0xf] %v95_v47 }
  0x2c   :  { %102 = vsyncpa [#allocation3], 1 }

// kernel: a_call__.8
= control target key start
LH: loop header
LB: loop body
LE: loop exit
PB: predicated region body
PF: predicated region fallthrough
CT: control target
= control target key end

     0   :  { %7 = vsyncpa [#allocation3], 0  ;;  %s182_s0 = inlined_call_operand.vmem [shape: f32[4,4], index: 0, kind: input, shape index: {}]   ;;  %s183_s1 = inlined_call_operand.vmem [shape: f32[4,1,128], index: 1, kind: input, shape index: {}]   ;;  %s184_s2 = inlined_call_operand.vmem [shape: f32[4,1,128], index: 2, kind: output, shape index: {}]  }
   0x1   :  { %s14_s11 = sshll.u32 %s182_s0, 4  ;;  %s15_s11 = int_to_ptr.vmem [resolvable:$true] %s14_s11 }
   0x2   :  { %s125_s12 = scalar_lea.vmem %s15_s11, 64  ;;  %p130_p1 = scmp.lt.s32.totalorder %s15_s11, %s15_s11 }
   0x3   :  { %p126_p0 = scmp.ne.s32.totalorder %s15_s11, %s125_s12  ;;  %p131_p2 = scmp.lt.s32.totalorder %s125_s12, %s125_s12 }
   0x5   :  { %p132_p3 = por %p131_p2, %p130_p1 }
   0x7   :  { %p133_p4 = pnand %p132_p3, %p126_p0 }
   0x9   :  { %136 = shalt.err (!%p133_p4)
}
   0xa   :  { %s139_s13 = smov [#allocation2]  }
   0xb   :  { %17 = dma.vmem_to_smem %s15_s11, 64, %s139_s13, [#allocation3]  }
   0xc   :  { %137 = dma.done.wait [#allocation3], 64  }
   0xd   :  { %138 = vsyncadd [#allocation3], 4294967232 }
   0xe   :  { %23 = sfence }
   0xf   :  { %s31_s14 = sld [smem:[#allocation2]]  ;;  %v24_v0 = vld [vmem:[%s183_s1] sm:$0x1]  ;;  %v103_v1 = vld [vmem:[%s183_s1 + $0x1] sm:$0x1] }
  0x10   :  { %s106_s15 = sld [smem:[#allocation2 + $0x1]]  ;;  %v104_v2 = vld [vmem:[%s183_s1 + $0x2] sm:$0x1]  ;;  %v105_v4 = vld [vmem:[%s183_s1 + $0x3] sm:$0x1] }
  0x11   :  { %s107_s16 = sld [smem:[#allocation2 + $0x2]] }
  0x12   :  { %s108_s17 = sld [smem:[#allocation2 + $0x3]] }
  0x13   :  { %s109_s0 = sld [smem:[#allocation2 + $0x80]] }
  0x14   :  { %s110_s22 = sld [smem:[#allocation2 + $0x81]] }
  0x15   :  { %v32_v3 = vstv %s31_s14  ;;  %s111_s25 = sld [smem:[#allocation2 + $0x82]] }
  0x16   :  { %v33_v5 = vmul.f32 %v32_v3, %v24_v0  ;;  %v35_v6 = vstv %s106_s15  ;;  %s112_s28 = sld [smem:[#allocation2 + $0x83]] }
  0x17   :  { %v36_v7 = vmul.f32 %v103_v1, %v35_v6  ;;  %v39_v8 = vstv %s107_s16  ;;  %s114_s29 = sld [smem:[#allocation2 + $0x100]] }
  0x18   :  { %v40_v9 = vmul.f32 %v104_v2, %v39_v8  ;;  %v43_v10 = vstv %s108_s17  ;;  %s115_s30 = sld [smem:[#allocation2 + $0x101]] }
  0x19   :  { %v37_v11 = vadd.f32 %v36_v7, %v33_v5  ;;  %v44_v12 = vmul.f32 %v105_v4, %v43_v10  ;;  %v48_v13 = vstv %s109_s0  ;;  %s116_s3 = sld [smem:[#allocation2 + $0x102]] }
  0x1a   :  { %v49_v14 = vmul.f32 %v48_v13, %v24_v0  ;;  %v51_v15 = vstv %s110_s22  ;;  %s117_s4 = sld [smem:[#allocation2 + $0x103]] }
  0x1b   :  { %v41_v16 = vadd.f32 %v40_v9, %v37_v11  ;;  %v52_v17 = vmul.f32 %v103_v1, %v51_v15  ;;  %v55_v18 = vstv %s111_s25  ;;  %s119_s1 = sld [smem:[#allocation2 + $0x180]] }
  0x1c   :  { %v56_v19 = vmul.f32 %v104_v2, %v55_v18  ;;  %v59_v20 = vstv %s112_s28  ;;  %s120_s5 = sld [smem:[#allocation2 + $0x181]] }
  0x1d   :  { %v45_v21 = vadd.f32 %v44_v12, %v41_v16  ;;  %v53_v22 = vadd.f32 %v52_v17, %v49_v14  ;;  %v60_v23 = vmul.f32 %v105_v4, %v59_v20  ;;  %v65_v24 = vstv %s114_s29  ;;  %s121_s6 = sld [smem:[#allocation2 + $0x182]] }
  0x1e   :  { %v66_v25 = vmul.f32 %v65_v24, %v24_v0  ;;  %v68_v26 = vstv %s115_s30  ;;  %s122_s7 = sld [smem:[#allocation2 + $0x183]] }
  0x1f   :  { %46 = vst [vmem:[%s184_s2] sm:$0x1] %v45_v21  ;;  %v57_v27 = vadd.f32 %v56_v19, %v53_v22  ;;  %v69_v28 = vmul.f32 %v103_v1, %v68_v26  ;;  %v72_v29 = vstv %s116_s3 }
  0x20   :  { %v73_v30 = vmul.f32 %v104_v2, %v72_v29  ;;  %v76_v31 = vstv %s117_s4 }
  0x21   :  { %v61_v32 = vadd.f32 %v60_v23, %v57_v27  ;;  %v70_v33 = vadd.f32 %v69_v28, %v66_v25  ;;  %v77_v34 = vmul.f32 %v105_v4, %v76_v31  ;;  %v82_v35 = vstv %s119_s1 }
  0x22   :  { %v83_v36 = vmul.f32 %v82_v35, %v24_v0  ;;  %v85_v37 = vstv %s120_s5 }
  0x23   :  { %113 = vst [vmem:[%s184_s2 + $0x1] sm:$0x1] %v61_v32  ;;  %v74_v38 = vadd.f32 %v73_v30, %v70_v33  ;;  %v86_v39 = vmul.f32 %v103_v1, %v85_v37  ;;  %v89_v40 = vstv %s121_s6 }
  0x24   :  { %v90_v41 = vmul.f32 %v104_v2, %v89_v40  ;;  %v93_v42 = vstv %s122_s7 }
  0x25   :  { %v78_v43 = vadd.f32 %v77_v34, %v74_v38  ;;  %v87_v44 = vadd.f32 %v86_v39, %v83_v36  ;;  %v94_v45 = vmul.f32 %v105_v4, %v93_v42 }
  0x27   :  { %118 = vst [vmem:[%s184_s2 + $0x2] sm:$0x1] %v78_v43  ;;  %v91_v46 = vadd.f32 %v90_v41, %v87_v44 }
  0x29   :  { %v95_v47 = vadd.f32 %v94_v45, %v91_v46 }
  0x2b   :  { %123 = vst [vmem:[%s184_s2 + $0x3] sm:$0x1] %v95_v47 }
  0x2c   :  { %102 = vsyncpa [#allocation3], 1 }

// kernel: a_call__.6
= control target key start
LH: loop header
LB: loop body
LE: loop exit
PB: predicated region body
PF: predicated region fallthrough
CT: control target
= control target key end

     0   :  { %7 = vsyncpa [#allocation3], 0  ;;  %s182_s0 = inlined_call_operand.vmem [shape: f32[4,4], index: 0, kind: input, shape index: {}]   ;;  %s183_s1 = inlined_call_operand.vmem [shape: f32[4,3,128], index: 1, kind: input, shape index: {}]   ;;  %s184_s2 = inlined_call_operand.vmem [shape: f32[4,3,128], index: 2, kind: output, shape index: {}]  }
   0x1   :  { %s14_s11 = sshll.u32 %s182_s0, 4  ;;  %s15_s11 = int_to_ptr.vmem [resolvable:$true] %s14_s11 }
   0x2   :  { %s125_s12 = scalar_lea.vmem %s15_s11, 64  ;;  %p130_p1 = scmp.lt.s32.totalorder %s15_s11, %s15_s11 }
   0x3   :  { %p126_p0 = scmp.ne.s32.totalorder %s15_s11, %s125_s12  ;;  %p131_p2 = scmp.lt.s32.totalorder %s125_s12, %s125_s12 }
   0x5   :  { %p132_p3 = por %p131_p2, %p130_p1 }
   0x7   :  { %p133_p4 = pnand %p132_p3, %p126_p0 }
   0x9   :  { %136 = shalt.err (!%p133_p4)
}
   0xa   :  { %s139_s13 = smov [#allocation2]  }
   0xb   :  { %17 = dma.vmem_to_smem %s15_s11, 64, %s139_s13, [#allocation3]  }
   0xc   :  { %137 = dma.done.wait [#allocation3], 64  }
   0xd   :  { %138 = vsyncadd [#allocation3], 4294967232 }
   0xe   :  { %23 = sfence }
   0xf   :  { %s31_s14 = sld [smem:[#allocation2]]  ;;  %v24_v0 = vld [vmem:[%s183_s1] sm:$0x7]  ;;  %v103_v1 = vld [vmem:[%s183_s1 + $0x4] sm:$0x7] }
  0x10   :  { %s106_s15 = sld [smem:[#allocation2 + $0x1]]  ;;  %v104_v2 = vld [vmem:[%s183_s1 + $0x8] sm:$0x7]  ;;  %v105_v4 = vld [vmem:[%s183_s1 + $0xc] sm:$0x7] }
  0x11   :  { %s107_s16 = sld [smem:[#allocation2 + $0x2]] }
  0x12   :  { %s108_s17 = sld [smem:[#allocation2 + $0x3]] }
  0x13   :  { %s109_s0 = sld [smem:[#allocation2 + $0x80]] }
  0x14   :  { %s110_s22 = sld [smem:[#allocation2 + $0x81]] }
  0x15   :  { %v32_v3 = vstv %s31_s14  ;;  %s111_s25 = sld [smem:[#allocation2 + $0x82]] }
  0x16   :  { %v33_v5 = vmul.f32 %v32_v3, %v24_v0  ;;  %v35_v6 = vstv %s106_s15  ;;  %s112_s28 = sld [smem:[#allocation2 + $0x83]] }
  0x17   :  { %v36_v7 = vmul.f32 %v103_v1, %v35_v6  ;;  %v39_v8 = vstv %s107_s16  ;;  %s114_s29 = sld [smem:[#allocation2 + $0x100]] }
  0x18   :  { %v40_v9 = vmul.f32 %v104_v2, %v39_v8  ;;  %v43_v10 = vstv %s108_s17  ;;  %s115_s30 = sld [smem:[#allocation2 + $0x101]] }
  0x19   :  { %v37_v11 = vadd.f32 %v36_v7, %v33_v5  ;;  %v44_v12 = vmul.f32 %v105_v4, %v43_v10  ;;  %v48_v13 = vstv %s109_s0  ;;  %s116_s3 = sld [smem:[#allocation2 + $0x102]] }
  0x1a   :  { %v49_v14 = vmul.f32 %v48_v13, %v24_v0  ;;  %v51_v15 = vstv %s110_s22  ;;  %s117_s4 = sld [smem:[#allocation2 + $0x103]] }
  0x1b   :  { %v41_v16 = vadd.f32 %v40_v9, %v37_v11  ;;  %v52_v17 = vmul.f32 %v103_v1, %v51_v15  ;;  %v55_v18 = vstv %s111_s25  ;;  %s119_s1 = sld [smem:[#allocation2 + $0x180]] }
  0x1c   :  { %v56_v19 = vmul.f32 %v104_v2, %v55_v18  ;;  %v59_v20 = vstv %s112_s28  ;;  %s120_s5 = sld [smem:[#allocation2 + $0x181]] }
  0x1d   :  { %v45_v21 = vadd.f32 %v44_v12, %v41_v16  ;;  %v53_v22 = vadd.f32 %v52_v17, %v49_v14  ;;  %v60_v23 = vmul.f32 %v105_v4, %v59_v20  ;;  %v65_v24 = vstv %s114_s29  ;;  %s121_s6 = sld [smem:[#allocation2 + $0x182]] }
  0x1e   :  { %v66_v25 = vmul.f32 %v65_v24, %v24_v0  ;;  %v68_v26 = vstv %s115_s30  ;;  %s122_s7 = sld [smem:[#allocation2 + $0x183]] }
  0x1f   :  { %46 = vst [vmem:[%s184_s2] sm:$0x7] %v45_v21  ;;  %v57_v27 = vadd.f32 %v56_v19, %v53_v22  ;;  %v69_v28 = vmul.f32 %v103_v1, %v68_v26  ;;  %v72_v29 = vstv %s116_s3 }
  0x20   :  { %v73_v30 = vmul.f32 %v104_v2, %v72_v29  ;;  %v76_v31 = vstv %s117_s4 }
  0x21   :  { %v61_v32 = vadd.f32 %v60_v23, %v57_v27  ;;  %v70_v33 = vadd.f32 %v69_v28, %v66_v25  ;;  %v77_v34 = vmul.f32 %v105_v4, %v76_v31  ;;  %v82_v35 = vstv %s119_s1 }
  0x22   :  { %v83_v36 = vmul.f32 %v82_v35, %v24_v0  ;;  %v85_v37 = vstv %s120_s5 }
  0x23   :  { %113 = vst [vmem:[%s184_s2 + $0x4] sm:$0x7] %v61_v32  ;;  %v74_v38 = vadd.f32 %v73_v30, %v70_v33  ;;  %v86_v39 = vmul.f32 %v103_v1, %v85_v37  ;;  %v89_v40 = vstv %s121_s6 }
  0x24   :  { %v90_v41 = vmul.f32 %v104_v2, %v89_v40  ;;  %v93_v42 = vstv %s122_s7 }
  0x25   :  { %v78_v43 = vadd.f32 %v77_v34, %v74_v38  ;;  %v87_v44 = vadd.f32 %v86_v39, %v83_v36  ;;  %v94_v45 = vmul.f32 %v105_v4, %v93_v42 }
  0x27   :  { %118 = vst [vmem:[%s184_s2 + $0x8] sm:$0x7] %v78_v43  ;;  %v91_v46 = vadd.f32 %v90_v41, %v87_v44 }
  0x29   :  { %v95_v47 = vadd.f32 %v94_v45, %v91_v46 }
  0x2b   :  { %123 = vst [vmem:[%s184_s2 + $0xc] sm:$0x7] %v95_v47 }
  0x2c   :  { %102 = vsyncpa [#allocation3], 1 }

</bundles_post_ra>
